<compile_context>
chip_gen: v7x
topology: tpu7x:2x2x1
jax: 0.10.0
libtpu: 0.0.40
codegen_flags: <defaults>
</compile_context>

<pallas_src>
import jax
import jax.numpy as jnp
from jax.experimental import pallas as pl
from jax.experimental.pallas import tpu as pltpu


def _decoder_kernel(x_ref,
                    w1_ref, b1_ref,
                    w2_ref, b2_ref,
                    w3_ref, b3_ref,
                    w4_ref, b4_ref,
                    o_ref):
    cdt = w1_ref.dtype  # matmul input dtype (bf16 or f32); accumulation is f32

    # Layer 1: Linear(latent -> 128) + ReLU  (x is already in compute dtype)
    h = jnp.dot(x_ref[...], w1_ref[...], preferred_element_type=jnp.float32)
    h = jnp.maximum(h + b1_ref[...], 0.0)
    # Layer 2: Linear(128 -> 256) + ReLU
    h = jnp.dot(h.astype(cdt), w2_ref[...], preferred_element_type=jnp.float32)
    h = jnp.maximum(h + b2_ref[...], 0.0)
    # Layer 3: Linear(256 -> 512) + ReLU
    h = jnp.dot(h.astype(cdt), w3_ref[...], preferred_element_type=jnp.float32)
    h = jnp.maximum(h + b3_ref[...], 0.0)
    # Layer 4: Linear(512 -> 784) + Sigmoid.
    # Sigmoid via tanh: a single EUP transcendental, numerically exact.
    z = jnp.dot(h.astype(cdt), w4_ref[...],
                preferred_element_type=jnp.float32) + b4_ref[...]
    o_ref[...] = (0.5 * jnp.tanh(0.5 * z) + 0.5).astype(o_ref.dtype)


def _round_up(n, m):
    return ((n + m - 1) // m) * m


def decoder_forward(x, params, *, batch_tile=1024, use_bf16=True,
                    out_dtype=jnp.float32):
    """4-layer MLP decoder (Linear+ReLU x3, Linear+Sigmoid) as one Pallas kernel.

    x: (B, latent_dim) float32
    params: dict with w1..w4 stored (in_features, out_features), b1..b4 (1, out)
    use_bf16: bf16 weights + inter-layer activations (f32 accumulation).
    out_dtype: jnp.float32 (PyTorch parity) or jnp.bfloat16 (halves HBM writes).
    returns: (B, 1, 28, 28) in out_dtype
    """
    B, latent_dim = x.shape
    h1 = params["w1"].shape[1]
    h2 = params["w2"].shape[1]
    h3 = params["w3"].shape[1]
    out_dim = params["w4"].shape[1]

    # Lane-align only the latent (64 -> 128); the output stays at its true
    # width (784) so no padded columns are ever written to HBM.
    lat_p = _round_up(latent_dim, 128)

    compute_dtype = jnp.bfloat16 if use_bf16 else jnp.float32

    # ---- batch tiling: near-equal 8-multiple tiles, >= 2 steps when possible.
    n_tiles = max(pl.cdiv(B, batch_tile), 1)
    if n_tiles < 2 and B >= 16:
        n_tiles = 2            # keep both v7x TensorCores busy ("parallel" axis)
    tile = _round_up(pl.cdiv(B, n_tiles), 8)
    Bp = _round_up(B, tile)
    grid = (Bp // tile,)

    # ---- wrapper-side layout glue (zero padding + dtype casts only) ----
    xp = x
    if lat_p != latent_dim or Bp != B:
        xp = jnp.pad(xp, ((0, Bp - B), (0, lat_p - latent_dim)))
    xp = xp.astype(compute_dtype)

    w1 = jnp.pad(params["w1"], ((0, lat_p - latent_dim), (0, 0))).astype(compute_dtype)
    w2 = params["w2"].astype(compute_dtype)
    w3 = params["w3"].astype(compute_dtype)
    w4 = params["w4"].astype(compute_dtype)
    # Biases stay f32: they are added to the f32 accumulator.
    b1 = params["b1"].astype(jnp.float32)
    b2 = params["b2"].astype(jnp.float32)
    b3 = params["b3"].astype(jnp.float32)
    b4 = params["b4"].astype(jnp.float32)

    def const_spec(arr):
        # Whole array, same block every grid step -> stays resident in VMEM.
        return pl.BlockSpec(arr.shape, lambda i: (0, 0))

    flops = 2 * Bp * (lat_p * h1 + h1 * h2 + h2 * h3 + h3 * out_dim)
    weight_bytes = sum(int(a.size) * a.dtype.itemsize
                       for a in (w1, b1, w2, b2, w3, b3, w4, b4))
    out_itemsize = jnp.dtype(out_dtype).itemsize
    bytes_accessed = (int(xp.size) * xp.dtype.itemsize
                      + Bp * out_dim * out_itemsize + weight_bytes)
    cost = pl.CostEstimate(flops=flops,
                           transcendentals=Bp * out_dim,   # one tanh per output
                           bytes_accessed=bytes_accessed)

    flat = pl.pallas_call(
        _decoder_kernel,
        out_shape=jax.ShapeDtypeStruct((Bp, out_dim), out_dtype),
        grid_spec=pltpu.PrefetchScalarGridSpec(
            num_scalar_prefetch=0,
            grid=grid,
            in_specs=[
                pl.BlockSpec((tile, lat_p), lambda i: (i, 0)),
                const_spec(w1), const_spec(b1),
                const_spec(w2), const_spec(b2),
                const_spec(w3), const_spec(b3),
                const_spec(w4), const_spec(b4),
            ],
            out_specs=pl.BlockSpec((tile, out_dim), lambda i: (i, 0)),
        ),
        compiler_params=pltpu.CompilerParams(
            dimension_semantics=("parallel",),   # batch axis shards across TCs
            vmem_limit_bytes=48 * 1024 * 1024,
        ),
        cost_estimate=cost,
    )(xp, w1, b1, w2, b2, w3, b3, w4, b4)

    # Only slice rows when the batch was padded; columns are never padded.
    if Bp != B:
        flat = flat[:B]
    # PyTorch's x.view(B, 1, 28, 28) — contiguous reshape, effectively free.
    return flat.reshape(B, 1, 28, 28)


def init_decoder_params(key, latent_dim=64, output_dim=784):
    """Deterministic init mirroring nn.Linear's U(-1/sqrt(in), 1/sqrt(in))."""
    dims = [(latent_dim, 128), (128, 256), (256, 512), (512, output_dim)]
    params = {}
    keys = jax.random.split(key, 2 * len(dims))
    for idx, (fan_in, fan_out) in enumerate(dims):
        bound = 1.0 / (fan_in ** 0.5)
        w = jax.random.uniform(keys[2 * idx], (fan_in, fan_out),
                               minval=-bound, maxval=bound, dtype=jnp.float32)
        b = jax.random.uniform(keys[2 * idx + 1], (1, fan_out),
                               minval=-bound, maxval=bound, dtype=jnp.float32)
        params[f"w{idx + 1}"] = w
        params[f"b{idx + 1}"] = b
    return params


def decoder_ref(x, params):
    """Pure-JAX reference of the same forward pass (for sanity checking)."""
    h = jax.nn.relu(x @ params["w1"] + params["b1"])
    h = jax.nn.relu(h @ params["w2"] + params["b2"])
    h = jax.nn.relu(h @ params["w3"] + params["b3"])
    out = jax.nn.sigmoid(h @ params["w4"] + params["b4"])
    return out.reshape(x.shape[0], 1, 28, 28)


if __name__ == "__main__":
    key = jax.random.PRNGKey(0)
    k_params, k_x = jax.random.split(key)

    latent_dim = 64
    output_dim = 784
    batch = 12  # not a multiple of 8 -> exercises batch padding + row slice

    params = init_decoder_params(k_params, latent_dim, output_dim)
    x = jax.random.normal(k_x, (batch, latent_dim), dtype=jnp.float32)

    ref = decoder_ref(x, params)

    # Default path: bf16 matmuls (f32 accumulation), f32 output.
    out = jax.block_until_ready(decoder_forward(x, params))
    assert out.shape == (batch, 1, 28, 28), out.shape
    assert out.dtype == jnp.float32, out.dtype
    err = float(jnp.max(jnp.abs(out - ref)))
    assert err < 3e-2, err  # bf16 weights + activations across 4 layers

    # Strict-parity path: f32 matmuls, exact sigmoid (tanh form).
    out_f32 = jax.block_until_ready(decoder_forward(x, params, use_bf16=False))
    err_f32 = float(jnp.max(jnp.abs(out_f32 - ref)))
    assert err_f32 < 1e-4, err_f32

    # Fastest path: bf16 matmuls + bf16 output (halves HBM write traffic).
    out_bf16 = jax.block_until_ready(
        decoder_forward(x, params, out_dtype=jnp.bfloat16))
    assert out_bf16.dtype == jnp.bfloat16
    err_bf16 = float(jnp.max(jnp.abs(out_bf16.astype(jnp.float32) - ref)))
    assert err_bf16 < 3e-2, err_bf16

    print("KERNEL_OK")
</pallas_src>

<mosaic_0001>
module attributes {stable_mosaic.version = 11 : i64} {
  func.func @_decoder_kernel(%arg0: i32, %arg1: memref<16x128xbf16, #tpu.memory_space<vmem>>, %arg2: memref<128x128xbf16, #tpu.memory_space<vmem>>, %arg3: memref<1x128xf32, #tpu.memory_space<vmem>>, %arg4: memref<128x256xbf16, #tpu.memory_space<vmem>>, %arg5: memref<1x256xf32, #tpu.memory_space<vmem>>, %arg6: memref<256x512xbf16, #tpu.memory_space<vmem>>, %arg7: memref<1x512xf32, #tpu.memory_space<vmem>>, %arg8: memref<512x784xbf16, #tpu.memory_space<vmem>>, %arg9: memref<1x784xf32, #tpu.memory_space<vmem>>, %arg10: memref<16x784xf32, #tpu.memory_space<vmem>>) attributes {dimension_semantics = [#tpu.dimension_semantics<parallel>], iteration_bounds = array<i64: 1>, scalar_prefetch = 0 : i64, scratch_operands = 0 : i64, tpu.core_type = #tpu.core_type<tc>, window_params = [{transform_indices = @transform_0, window_bounds = array<i64: 16, 128>}, {pipeline_mode = #tpu.pipeline_mode<synchronous>, transform_indices = @transform_1, window_bounds = array<i64: 128, 128>}, {pipeline_mode = #tpu.pipeline_mode<synchronous>, transform_indices = @transform_2, window_bounds = array<i64: 1, 128>}, {pipeline_mode = #tpu.pipeline_mode<synchronous>, transform_indices = @transform_3, window_bounds = array<i64: 128, 256>}, {pipeline_mode = #tpu.pipeline_mode<synchronous>, transform_indices = @transform_4, window_bounds = array<i64: 1, 256>}, {pipeline_mode = #tpu.pipeline_mode<synchronous>, transform_indices = @transform_5, window_bounds = array<i64: 256, 512>}, {pipeline_mode = #tpu.pipeline_mode<synchronous>, transform_indices = @transform_6, window_bounds = array<i64: 1, 512>}, {pipeline_mode = #tpu.pipeline_mode<synchronous>, transform_indices = @transform_7, window_bounds = array<i64: 512, 784>}, {pipeline_mode = #tpu.pipeline_mode<synchronous>, transform_indices = @transform_8, window_bounds = array<i64: 1, 784>}, {transform_indices = @transform_9, window_bounds = array<i64: 16, 784>}]} {
    %c0 = arith.constant 0 : index
    %c0_0 = arith.constant 0 : index
    %0 = vector.load %arg1[%c0, %c0_0] : memref<16x128xbf16, #tpu.memory_space<vmem>>, vector<16x128xbf16>
    %c0_1 = arith.constant 0 : index
    %c0_2 = arith.constant 0 : index
    %1 = vector.load %arg2[%c0_1, %c0_2] : memref<128x128xbf16, #tpu.memory_space<vmem>>, vector<128x128xbf16>
    %cst = arith.constant dense<0.000000e+00> : vector<16x128xf32>
    %2 = tpu.matmul %0, %1, %cst {dimension_numbers = #tpu.dot_dimension_numbers<[1], [0], [0], [1], [0, 0, 1, 1], [], []>} : vector<16x128xbf16>, vector<128x128xbf16>, vector<16x128xf32> -> vector<16x128xf32>
    %c0_3 = arith.constant 0 : index
    %c0_4 = arith.constant 0 : index
    %3 = vector.load %arg3[%c0_3, %c0_4] : memref<1x128xf32, #tpu.memory_space<vmem>>, vector<1x128xf32>
    %4 = vector.broadcast %3 : vector<1x128xf32> to vector<16x128xf32>
    %5 = arith.addf %2, %4 : vector<16x128xf32>
    %cst_5 = arith.constant 0.000000e+00 : f32
    %6 = vector.broadcast %cst_5 : f32 to vector<16x128xf32>
    %7 = arith.maximumf %5, %6 : vector<16x128xf32>
    %8 = arith.truncf %7 : vector<16x128xf32> to vector<16x128xbf16>
    %c0_6 = arith.constant 0 : index
    %c0_7 = arith.constant 0 : index
    %9 = vector.load %arg4[%c0_6, %c0_7] : memref<128x256xbf16, #tpu.memory_space<vmem>>, vector<128x256xbf16>
    %cst_8 = arith.constant dense<0.000000e+00> : vector<16x256xf32>
    %10 = tpu.matmul %8, %9, %cst_8 {dimension_numbers = #tpu.dot_dimension_numbers<[1], [0], [0], [1], [0, 0, 1, 1], [], []>} : vector<16x128xbf16>, vector<128x256xbf16>, vector<16x256xf32> -> vector<16x256xf32>
    %c0_9 = arith.constant 0 : index
    %c0_10 = arith.constant 0 : index
    %11 = vector.load %arg5[%c0_9, %c0_10] : memref<1x256xf32, #tpu.memory_space<vmem>>, vector<1x256xf32>
    %12 = vector.broadcast %11 : vector<1x256xf32> to vector<16x256xf32>
    %13 = arith.addf %10, %12 : vector<16x256xf32>
    %cst_11 = arith.constant 0.000000e+00 : f32
    %14 = vector.broadcast %cst_11 : f32 to vector<16x256xf32>
    %15 = arith.maximumf %13, %14 : vector<16x256xf32>
    %16 = arith.truncf %15 : vector<16x256xf32> to vector<16x256xbf16>
    %c0_12 = arith.constant 0 : index
    %c0_13 = arith.constant 0 : index
    %17 = vector.load %arg6[%c0_12, %c0_13] : memref<256x512xbf16, #tpu.memory_space<vmem>>, vector<256x512xbf16>
    %cst_14 = arith.constant dense<0.000000e+00> : vector<16x512xf32>
    %18 = tpu.matmul %16, %17, %cst_14 {dimension_numbers = #tpu.dot_dimension_numbers<[1], [0], [0], [1], [0, 0, 1, 1], [], []>} : vector<16x256xbf16>, vector<256x512xbf16>, vector<16x512xf32> -> vector<16x512xf32>
    %c0_15 = arith.constant 0 : index
    %c0_16 = arith.constant 0 : index
    %19 = vector.load %arg7[%c0_15, %c0_16] : memref<1x512xf32, #tpu.memory_space<vmem>>, vector<1x512xf32>
    %20 = vector.broadcast %19 : vector<1x512xf32> to vector<16x512xf32>
    %21 = arith.addf %18, %20 : vector<16x512xf32>
    %cst_17 = arith.constant 0.000000e+00 : f32
    %22 = vector.broadcast %cst_17 : f32 to vector<16x512xf32>
    %23 = arith.maximumf %21, %22 : vector<16x512xf32>
    %24 = arith.truncf %23 : vector<16x512xf32> to vector<16x512xbf16>
    %c0_18 = arith.constant 0 : index
    %c0_19 = arith.constant 0 : index
    %25 = vector.load %arg8[%c0_18, %c0_19] : memref<512x784xbf16, #tpu.memory_space<vmem>>, vector<512x784xbf16>
    %cst_20 = arith.constant dense<0.000000e+00> : vector<16x784xf32>
    %26 = tpu.matmul %24, %25, %cst_20 {dimension_numbers = #tpu.dot_dimension_numbers<[1], [0], [0], [1], [0, 0, 1, 1], [], []>} : vector<16x512xbf16>, vector<512x784xbf16>, vector<16x784xf32> -> vector<16x784xf32>
    %c0_21 = arith.constant 0 : index
    %c0_22 = arith.constant 0 : index
    %27 = vector.load %arg9[%c0_21, %c0_22] : memref<1x784xf32, #tpu.memory_space<vmem>>, vector<1x784xf32>
    %28 = vector.broadcast %27 : vector<1x784xf32> to vector<16x784xf32>
    %29 = arith.addf %26, %28 : vector<16x784xf32>
    %cst_23 = arith.constant 5.000000e-01 : f32
    %30 = vector.broadcast %cst_23 : f32 to vector<16x784xf32>
    %31 = arith.mulf %30, %29 : vector<16x784xf32>
    %32 = math.tanh %31 : vector<16x784xf32>
    %cst_24 = arith.constant 5.000000e-01 : f32
    %33 = vector.broadcast %cst_24 : f32 to vector<16x784xf32>
    %34 = arith.mulf %33, %32 : vector<16x784xf32>
    %cst_25 = arith.constant 5.000000e-01 : f32
    %35 = vector.broadcast %cst_25 : f32 to vector<16x784xf32>
    %36 = arith.addf %34, %35 : vector<16x784xf32>
    %c0_26 = arith.constant 0 : index
    %c0_27 = arith.constant 0 : index
    %37 = vector.load %arg10[%c0_26, %c0_27] : memref<16x784xf32, #tpu.memory_space<vmem>>, vector<16x784xf32>
    tpu.vector_store %arg10[%c0_26, %c0_27], %36 {strides = array<i32>} : memref<16x784xf32, #tpu.memory_space<vmem>>, vector<16x784xf32>,
    return
  }
  func.func @transform_0(%arg0: i32) -> (i32, i32) {
    %c0_i32 = arith.constant 0 : i32
    %c0_i32_0 = arith.constant 0 : i32
    return %arg0, %c0_i32 : i32, i32
  }
  func.func @transform_1(%arg0: i32) -> (i32, i32) {
    %c0_i32 = arith.constant 0 : i32
    %c0_i32_0 = arith.constant 0 : i32
    %c0_i32_1 = arith.constant 0 : i32
    return %c0_i32, %c0_i32_0 : i32, i32
  }
  func.func @transform_2(%arg0: i32) -> (i32, i32) {
    %c0_i32 = arith.constant 0 : i32
    %c0_i32_0 = arith.constant 0 : i32
    %c0_i32_1 = arith.constant 0 : i32
    return %c0_i32, %c0_i32_0 : i32, i32
  }
  func.func @transform_3(%arg0: i32) -> (i32, i32) {
    %c0_i32 = arith.constant 0 : i32
    %c0_i32_0 = arith.constant 0 : i32
    %c0_i32_1 = arith.constant 0 : i32
    return %c0_i32, %c0_i32_0 : i32, i32
  }
  func.func @transform_4(%arg0: i32) -> (i32, i32) {
    %c0_i32 = arith.constant 0 : i32
    %c0_i32_0 = arith.constant 0 : i32
    %c0_i32_1 = arith.constant 0 : i32
    return %c0_i32, %c0_i32_0 : i32, i32
  }
  func.func @transform_5(%arg0: i32) -> (i32, i32) {
    %c0_i32 = arith.constant 0 : i32
    %c0_i32_0 = arith.constant 0 : i32
    %c0_i32_1 = arith.constant 0 : i32
    return %c0_i32, %c0_i32_0 : i32, i32
  }
  func.func @transform_6(%arg0: i32) -> (i32, i32) {
    %c0_i32 = arith.constant 0 : i32
    %c0_i32_0 = arith.constant 0 : i32
    %c0_i32_1 = arith.constant 0 : i32
    return %c0_i32, %c0_i32_0 : i32, i32
  }
  func.func @transform_7(%arg0: i32) -> (i32, i32) {
    %c0_i32 = arith.constant 0 : i32
    %c0_i32_0 = arith.constant 0 : i32
    %c0_i32_1 = arith.constant 0 : i32
    return %c0_i32, %c0_i32_0 : i32, i32
  }
  func.func @transform_8(%arg0: i32) -> (i32, i32) {
    %c0_i32 = arith.constant 0 : i32
    %c0_i32_0 = arith.constant 0 : i32
    %c0_i32_1 = arith.constant 0 : i32
    return %c0_i32, %c0_i32_0 : i32, i32
  }
  func.func @transform_9(%arg0: i32) -> (i32, i32) {
    %c0_i32 = arith.constant 0 : i32
    %c0_i32_0 = arith.constant 0 : i32
    return %arg0, %c0_i32 : i32, i32
  }
}

</mosaic_0001>

<bundles_post_ra>
// kernel: tpu_custom_call.1
= control target key start
LH: loop header
LB: loop body
LE: loop exit
PB: predicated region body
PF: predicated region fallthrough
CT: control target
= control target key end

     0   :  { %v3608_v1 = vmov 0.0   ;;  %vm3609_vm0 = vmmov 0   ;;  %v3610_v26 = vmov 0   ;;  %s4687_s0 = inlined_call_operand.vmem [shape: bf16[16,128], index: 0, kind: input, shape index: {}]   ;;  %s4688_s1 = inlined_call_operand.vmem [shape: bf16[128,128], index: 1, kind: input, shape index: {}]   ;;  %s4689_s2 = inlined_call_operand.vmem [shape: f32[1,128], index: 2, kind: input, shape index: {}]   ;;  %s4690_s3 = inlined_call_operand.vmem [shape: bf16[128,256], index: 3, kind: input, shape index: {}]   ;;  %s4691_s4 = inlined_call_operand.vmem [shape: f32[1,256], index: 4, kind: input, shape index: {}]   ;;  %s4692_s5 = inlined_call_operand.vmem [shape: bf16[256,512], index: 5, kind: input, shape index: {}]   ;;  %s4693_s6 = inlined_call_operand.vmem [shape: f32[1,512], index: 6, kind: input, shape index: {}]   ;;  %s4694_s7 = inlined_call_operand.vmem [shape: bf16[512,784], index: 7, kind: input, shape index: {}]   ;;  %s4695_s8 = inlined_call_operand.vmem [shape: f32[1,784], index: 8, kind: input, shape index: {}]   ;;  %s4696_s9 = inlined_call_operand.hbm [shape: f32[16,784], index: 9, kind: output, shape index: {}]  }
   0x1   :  { %v3107_v0 = vld [vmem:[%s4688_s1] sm:$0xff]   ;;  %3057 = vmatprep.subr.bf16.mxu1 %v3608_v1  ;;  %v3108_v2 = vld [vmem:[%s4688_s1 + $0x8] sm:$0xff]   ;;  %3073 = vmatprep.mubr.msk.bf16.mxu1 %vm3609_vm0, %v3608_v1  ;;  %v3109_v3 = vld [vmem:[%s4688_s1 + $0x10] sm:$0xff]  }
   0x2   :  { %3058 = vmatpush3.bf16.msra.mxu1 %v3107_v0  ;;  %v3110_v4 = vld [vmem:[%s4688_s1 + $0x18] sm:$0xff]   ;;  %v3111_v5 = vld [vmem:[%s4688_s1 + $0x20] sm:$0xff]   ;;  %v3112_v6 = vld [vmem:[%s4688_s1 + $0x28] sm:$0xff]  }
   0x3   :  { %3059 = vmatprep.subr.bf16.mxu1 %v3608_v1  ;;  %v3113_v7 = vld [vmem:[%s4688_s1 + $0x30] sm:$0xff]   ;;  %v3114_v8 = vld [vmem:[%s4688_s1 + $0x38] sm:$0xff]   ;;  %v3118_v9 = vld [vmem:[%s4690_s3 + $0x4] ss:$8 sps:$4 sm:$0xff]  }
   0x4   :  { %v3115_v10 = vld [vmem:[%s4687_s0] sm:$0xff]   ;;  %v3121_v12 = vld [vmem:[%s4690_s3 + $0x14] ss:$8 sps:$4 sm:$0xff]   ;;  %v3119_v13 = vld [vmem:[%s4690_s3 + $0x10] ss:$8 sps:$4 sm:$0xff]  }
   0x5   :  { %v3116_v11 = vld [vmem:[%s4690_s3] ss:$8 sps:$4 sm:$0xff]   ;;  %v3124_v14 = vld [vmem:[%s4690_s3 + $0x24] ss:$8 sps:$4 sm:$0xff]   ;;  %v3127_v16 = vld [vmem:[%s4690_s3 + $0x34] ss:$8 sps:$4 sm:$0xff]  }
   0x6   :  { %3060 = vmatpush3.bf16.msra.mxu1 %v3108_v2  ;;  %v3122_v15 = vld [vmem:[%s4690_s3 + $0x20] ss:$8 sps:$4 sm:$0xff]   ;;  %v3125_v17 = vld [vmem:[%s4690_s3 + $0x30] ss:$8 sps:$4 sm:$0xff]   ;;  %v3130_v18 = vld [vmem:[%s4690_s3 + $0x44] ss:$8 sps:$4 sm:$0xff]  }
   0x7   :  { %3061 = vmatprep.subr.bf16.mxu1 %v3608_v1  ;;  %v3128_v19 = vld [vmem:[%s4690_s3 + $0x40] ss:$8 sps:$4 sm:$0xff]   ;;  %v3133_v20 = vld [vmem:[%s4690_s3 + $0x54] ss:$8 sps:$4 sm:$0xff]   ;;  %v3131_v21 = vld [vmem:[%s4690_s3 + $0x50] ss:$8 sps:$4 sm:$0xff]  }
   0x8   :  { %v3136_v22 = vld [vmem:[%s4690_s3 + $0x64] ss:$8 sps:$4 sm:$0xff]   ;;  %v3134_v23 = vld [vmem:[%s4690_s3 + $0x60] ss:$8 sps:$4 sm:$0xff]   ;;  %v3139_v24 = vld [vmem:[%s4690_s3 + $0x74] ss:$8 sps:$4 sm:$0xff]  }
   0x9   :  { %v3137_v25 = vld [vmem:[%s4690_s3 + $0x70] ss:$8 sps:$4 sm:$0xff]   ;;  %v3140_v27 = vld [vmem:[%s4692_s5 + $0x4] ss:$16 sps:$4 sm:$0xff]   ;;  %v3144_v28 = vld [vmem:[%s4692_s5 + $0xc] ss:$16 sps:$4 sm:$0xff]  }
   0xa   :  { %3062 = vmatpush3.bf16.msra.mxu1 %v3109_v3  ;;  %v3145_v29 = vld [vmem:[%s4692_s5] ss:$16 sps:$4 sm:$0xff]   ;;  %v3146_v30 = vld [vmem:[%s4692_s5 + $0x24] ss:$16 sps:$4 sm:$0xff]   ;;  %720 = vmatprep.subr.bf16.mxu0 %v3140_v27 }
   0xb   :  { %3063 = vmatprep.subr.bf16.mxu1 %v3608_v1  ;;  %v3151_v31 = vld [vmem:[%s4692_s5 + $0x20] ss:$16 sps:$4 sm:$0xff]   ;;  %721 = vmatpush1.bf16.msra.mxu0 %v3145_v29 }
   0xc   :  { %722 = vmatprep.subr.bf16.mxu0 %v3146_v30 }
   0xe   :  { %3064 = vmatpush3.bf16.msra.mxu1 %v3110_v4 }
   0xf   :  { %3065 = vmatprep.subr.bf16.mxu1 %v3608_v1 }
  0x12   :  { %3066 = vmatpush3.bf16.msra.mxu1 %v3111_v5 }
  0x13   :  { %3067 = vmatprep.subr.bf16.mxu1 %v3608_v1 }
  0x16   :  { %3068 = vmatpush3.bf16.msra.mxu1 %v3112_v6 }
  0x17   :  { %3069 = vmatprep.subr.bf16.mxu1 %v3608_v1 }
  0x1a   :  { %3070 = vmatpush3.bf16.msra.mxu1 %v3113_v7 }
  0x1b   :  { %3071 = vmatprep.subr.bf16.mxu1 %v3608_v1 }
  0x1e   :  { %3072 = vmatpush3.bf16.msra.mxu1 %v3114_v8 }
  0x1f   :  { %265 = vmatprep.subr.bf16.mxu1 %v3118_v9 }
  0x21   :  { %3074 = vmatmul.mubr.bf16.vlgmr.msra.gmra.mrb[0].mxu1 %v3115_v10 }
  0x22   :  { %266 = vmatpush1.bf16.msra.mxu1 %v3116_v11  ;;  %297 = vmatprep.mubr.bf16.mxu1 %v3610_v26 }
  0x23   :  { %267 = vmatprep.subr.bf16.mxu1 %v3121_v12 }
  0x26   :  { %268 = vmatpush1.bf16.msra.mxu1 %v3119_v13 }
  0x27   :  { %269 = vmatprep.subr.bf16.mxu1 %v3124_v14 }
  0x2a   :  { %270 = vmatpush1.bf16.msra.mxu1 %v3122_v15 }
  0x2b   :  { %271 = vmatprep.subr.bf16.mxu1 %v3127_v16 }
  0x2e   :  { %272 = vmatpush1.bf16.msra.mxu1 %v3125_v17 }
  0x2f   :  { %273 = vmatprep.subr.bf16.mxu1 %v3130_v18 }
  0x32   :  { %274 = vmatpush1.bf16.msra.mxu1 %v3128_v19 }
  0x33   :  { %275 = vmatprep.subr.bf16.mxu1 %v3133_v20 }
  0x36   :  { %276 = vmatpush1.bf16.msra.mxu1 %v3131_v21 }
  0x37   :  { %277 = vmatprep.subr.bf16.mxu1 %v3136_v22 }
  0x3a   :  { %278 = vmatpush1.bf16.msra.mxu1 %v3134_v23 }
  0x3b   :  { %279 = vmatprep.subr.bf16.mxu1 %v3139_v24 }
  0x3e   :  { %280 = vmatpush1.bf16.msra.mxu1 %v3137_v25 }
  0x3f   :  { %763 = vmatprep.subr.bf16.mxu1 %v3144_v28 }
  0x40   :  { %14 = vsyncpa [#allocation3], 0  ;;  %v3152_v32 = vld [vmem:[%s4692_s5 + $0x44] ss:$16 sps:$4 sm:$0xff]   ;;  %723 = vmatpush1.bf16.msra.mxu0 %v3151_v31  ;;  %v3157_v33 = vld [vmem:[%s4692_s5 + $0x40] ss:$16 sps:$4 sm:$0xff]  }
  0x41   :  { %724 = vmatprep.subr.bf16.mxu0 %v3152_v32  ;;  %v3158_v34 = vld [vmem:[%s4692_s5 + $0x64] ss:$16 sps:$4 sm:$0xff]   ;;  %v3163_v35 = vld [vmem:[%s4692_s5 + $0x60] ss:$16 sps:$4 sm:$0xff]   ;;  %v3142_v0 = vld [vmem:[%s4692_s5 + $0x8] ss:$16 sps:$4 sm:$0xff]  }
  0x42   :  { %v3164_v36 = vld [vmem:[%s4692_s5 + $0x84] ss:$16 sps:$4 sm:$0xff]   ;;  %v3169_v37 = vld [vmem:[%s4692_s5 + $0x80] ss:$16 sps:$4 sm:$0xff]   ;;  %v3150_v2 = vld [vmem:[%s4692_s5 + $0x2c] ss:$16 sps:$4 sm:$0xff]  }
  0x43   :  { %v3170_v38 = vld [vmem:[%s4692_s5 + $0xa4] ss:$16 sps:$4 sm:$0xff]   ;;  %v3175_v39 = vld [vmem:[%s4692_s5 + $0xa0] ss:$16 sps:$4 sm:$0xff]   ;;  %v3148_v3 = vld [vmem:[%s4692_s5 + $0x28] ss:$16 sps:$4 sm:$0xff]  }
  0x44   :  { %725 = vmatpush1.bf16.msra.mxu0 %v3157_v33  ;;  %v3176_v40 = vld [vmem:[%s4692_s5 + $0xc4] ss:$16 sps:$4 sm:$0xff]   ;;  %v3181_v41 = vld [vmem:[%s4692_s5 + $0xc0] ss:$16 sps:$4 sm:$0xff]   ;;  %v3156_v4 = vld [vmem:[%s4692_s5 + $0x4c] ss:$16 sps:$4 sm:$0xff]  }
  0x45   :  { %726 = vmatprep.subr.bf16.mxu0 %v3158_v34  ;;  %v3182_v42 = vld [vmem:[%s4692_s5 + $0xe4] ss:$16 sps:$4 sm:$0xff]   ;;  %v3187_v43 = vld [vmem:[%s4692_s5 + $0xe0] ss:$16 sps:$4 sm:$0xff]   ;;  %v3154_v5 = vld [vmem:[%s4692_s5 + $0x48] ss:$16 sps:$4 sm:$0xff]  }
  0x46   :  { %v3188_v44 = vld [vmem:[%s4692_s5 + $0x104] ss:$16 sps:$4 sm:$0xff]   ;;  %v3193_v45 = vld [vmem:[%s4692_s5 + $0x100] ss:$16 sps:$4 sm:$0xff]   ;;  %v3162_v6 = vld [vmem:[%s4692_s5 + $0x6c] ss:$16 sps:$4 sm:$0xff]  }
  0x47   :  { %v3194_v46 = vld [vmem:[%s4692_s5 + $0x124] ss:$16 sps:$4 sm:$0xff]   ;;  %v3199_v47 = vld [vmem:[%s4692_s5 + $0x120] ss:$16 sps:$4 sm:$0xff]   ;;  %v3160_v7 = vld [vmem:[%s4692_s5 + $0x68] ss:$16 sps:$4 sm:$0xff]  }
  0x48   :  { %727 = vmatpush1.bf16.msra.mxu0 %v3163_v35  ;;  %v3200_v48 = vld [vmem:[%s4692_s5 + $0x144] ss:$16 sps:$4 sm:$0xff]   ;;  %v3205_v49 = vld [vmem:[%s4692_s5 + $0x140] ss:$16 sps:$4 sm:$0xff]   ;;  %v3168_v8 = vld [vmem:[%s4692_s5 + $0x8c] ss:$16 sps:$4 sm:$0xff]  }
  0x49   :  { %728 = vmatprep.subr.bf16.mxu0 %v3164_v36  ;;  %v3206_v50 = vld [vmem:[%s4692_s5 + $0x164] ss:$16 sps:$4 sm:$0xff]   ;;  %v3211_v51 = vld [vmem:[%s4692_s5 + $0x160] ss:$16 sps:$4 sm:$0xff]   ;;  %v3166_v9 = vld [vmem:[%s4692_s5 + $0x88] ss:$16 sps:$4 sm:$0xff]  }
  0x4a   :  { %v3212_v52 = vld [vmem:[%s4692_s5 + $0x184] ss:$16 sps:$4 sm:$0xff]   ;;  %v3217_v53 = vld [vmem:[%s4692_s5 + $0x180] ss:$16 sps:$4 sm:$0xff]   ;;  %v3174_v10 = vld [vmem:[%s4692_s5 + $0xac] ss:$16 sps:$4 sm:$0xff]  }
  0x4b   :  { %v3218_v54 = vld [vmem:[%s4692_s5 + $0x1a4] ss:$16 sps:$4 sm:$0xff]   ;;  %v2690_v55 = vld [vmem:[%s4689_s2] ss:$0 sm:$0xff]  ;;  %v3172_v11 = vld [vmem:[%s4692_s5 + $0xa8] ss:$16 sps:$4 sm:$0xff]  }
  0x4c   :  { %729 = vmatpush1.bf16.msra.mxu0 %v3169_v37  ;;  %v3180_v12 = vld [vmem:[%s4692_s5 + $0xcc] ss:$16 sps:$4 sm:$0xff]   ;;  %v3178_v13 = vld [vmem:[%s4692_s5 + $0xc8] ss:$16 sps:$4 sm:$0xff]   ;;  %v3223_v28 = vld [vmem:[%s4692_s5 + $0x1a0] ss:$16 sps:$4 sm:$0xff]  }
  0x4d   :  { %730 = vmatprep.subr.bf16.mxu0 %v3170_v38  ;;  %v3186_v14 = vld [vmem:[%s4692_s5 + $0xec] ss:$16 sps:$4 sm:$0xff]   ;;  %v3184_v15 = vld [vmem:[%s4692_s5 + $0xe8] ss:$16 sps:$4 sm:$0xff]   ;;  %v3224_v29 = vld [vmem:[%s4692_s5 + $0x1c4] ss:$16 sps:$4 sm:$0xff]  }
  0x4e   :  { %v3192_v16 = vld [vmem:[%s4692_s5 + $0x10c] ss:$16 sps:$4 sm:$0xff]   ;;  %v3190_v17 = vld [vmem:[%s4692_s5 + $0x108] ss:$16 sps:$4 sm:$0xff]   ;;  %v3229_v32 = vld [vmem:[%s4692_s5 + $0x1c0] ss:$16 sps:$4 sm:$0xff]  }
  0x4f   :  { %v3198_v18 = vld [vmem:[%s4692_s5 + $0x12c] ss:$16 sps:$4 sm:$0xff]   ;;  %v3196_v19 = vld [vmem:[%s4692_s5 + $0x128] ss:$16 sps:$4 sm:$0xff]   ;;  %v3230_v33 = vld [vmem:[%s4692_s5 + $0x1e4] ss:$16 sps:$4 sm:$0xff]  }
  0x50   :  { %731 = vmatpush1.bf16.msra.mxu0 %v3175_v39  ;;  %v3204_v20 = vld [vmem:[%s4692_s5 + $0x14c] ss:$16 sps:$4 sm:$0xff]   ;;  %v3202_v21 = vld [vmem:[%s4692_s5 + $0x148] ss:$16 sps:$4 sm:$0xff]   ;;  %v3235_v36 = vld [vmem:[%s4692_s5 + $0x1e0] ss:$16 sps:$4 sm:$0xff]   ;;  %v175_v39 = vlaneseq }
  0x51   :  { %732 = vmatprep.subr.bf16.mxu0 %v3176_v40  ;;  %v3210_v22 = vld [vmem:[%s4692_s5 + $0x16c] ss:$16 sps:$4 sm:$0xff]   ;;  %v3208_v23 = vld [vmem:[%s4692_s5 + $0x168] ss:$16 sps:$4 sm:$0xff]   ;;  %v3238_v37 = vld [vmem:[%s4694_s7 + $0x4] ss:$28 sps:$4 sm:$0xff]  }
  0x52   :  { %v3216_v24 = vld [vmem:[%s4692_s5 + $0x18c] ss:$16 sps:$4 sm:$0xff]   ;;  %v3214_v25 = vld [vmem:[%s4692_s5 + $0x188] ss:$16 sps:$4 sm:$0xff]   ;;  %v3940_v40 = vshrl.u32 %v175_v39, 7  ;;  %vm2665_vm1 = vcmask 130048  }
  0x53   :  { %v3222_v26 = vld [vmem:[%s4692_s5 + $0x1ac] ss:$16 sps:$4 sm:$0xff]   ;;  %v3220_v27 = vld [vmem:[%s4692_s5 + $0x1a8] ss:$16 sps:$4 sm:$0xff]   ;;  %v3307_v39 = vld [vmem:[%s4694_s7 + $0x274] ss:$28 sps:$4 sm:$0xff]  }
  0x54   :  { %733 = vmatpush1.bf16.msra.mxu0 %v3181_v41  ;;  %v3228_v30 = vld [vmem:[%s4692_s5 + $0x1cc] ss:$16 sps:$4 sm:$0xff]   ;;  %v3226_v31 = vld [vmem:[%s4692_s5 + $0x1c8] ss:$16 sps:$4 sm:$0xff]   ;;  %v3943_v41 = vsub.s32 0, %v3940_v40 }
  0x55   :  { %734 = vmatprep.subr.bf16.mxu0 %v3182_v42  ;;  %v3234_v34 = vld [vmem:[%s4692_s5 + $0x1ec] ss:$16 sps:$4 sm:$0xff]   ;;  %v3232_v35 = vld [vmem:[%s4692_s5 + $0x1e8] ss:$16 sps:$4 sm:$0xff]   ;;  %v173_v42 = vld [vmem:[%s4691_s4] sm:$0x3] }
  0x56   :  { %v3241_v38 = vld [vmem:[%s4694_s7 + $0xc] ss:$28 sps:$4 sm:$0xff]  }
  0x58   :  { %735 = vmatpush1.bf16.msra.mxu0 %v3187_v43  ;;  %v3949_v43 = vsub.s32 1, %v3940_v40 }
  0x59   :  { %736 = vmatprep.subr.bf16.mxu0 %v3188_v44  ;;  %v178_v44 = vrot.slane %v173_v42, %v3943_v41 }
  0x5c   :  { %737 = vmatpush1.bf16.msra.mxu0 %v3193_v45  ;;  %v182_v45 = vrot.slane %v173_v42, %v3949_v43  ;;  %v3302_v42 = vld [vmem:[%s4694_s7 + $0x268] ss:$28 sps:$4 sm:$0xff]  }
  0x5d   :  { %738 = vmatprep.subr.bf16.mxu0 %v3194_v46 }
  0x60   :  { %739 = vmatpush1.bf16.msra.mxu0 %v3199_v47 }
  0x61   :  { %740 = vmatprep.subr.bf16.mxu0 %v3200_v48 }
  0x64   :  { %741 = vmatpush1.bf16.msra.mxu0 %v3205_v49 }
  0x65   :  { %742 = vmatprep.subr.bf16.mxu0 %v3206_v50 }
  0x68   :  { %743 = vmatpush1.bf16.msra.mxu0 %v3211_v51 }
  0x69   :  { %744 = vmatprep.subr.bf16.mxu0 %v3212_v52 }
  0x6c   :  { %745 = vmatpush1.bf16.msra.mxu0 %v3217_v53 }
  0x6d   :  { %746 = vmatprep.subr.bf16.mxu0 %v3218_v54 }
  0x70   :  { %747 = vmatpush1.bf16.msra.mxu0 %v3223_v28  ;;  %v3284_v28 = vld [vmem:[%s4694_s7 + $0x1c0] ss:$28 sps:$4 sm:$0xff]  }
  0x71   :  { %748 = vmatprep.subr.bf16.mxu0 %v3224_v29  ;;  %v3287_v29 = vld [vmem:[%s4694_s7 + $0x1c8] ss:$28 sps:$4 sm:$0xff]  }
  0x74   :  { %749 = vmatpush1.bf16.msra.mxu0 %v3229_v32  ;;  %v3290_v32 = vld [vmem:[%s4694_s7 + $0x1f8] ss:$28 sps:$4 sm:$0xff]  }
  0x75   :  { %750 = vmatprep.subr.bf16.mxu0 %v3230_v33  ;;  %v3293_v33 = vld [vmem:[%s4694_s7 + $0x200] ss:$28 sps:$4 sm:$0xff]  }
  0x78   :  { %751 = vmatpush1.bf16.msra.mxu0 %v3235_v36  ;;  %v3296_v36 = vld [vmem:[%s4694_s7 + $0x230] ss:$28 sps:$4 sm:$0xff]  }
  0x79   :  { %2263 = vmatprep.subr.bf16.mxu0 %v3238_v37  ;;  %v3299_v37 = vld [vmem:[%s4694_s7 + $0x238] ss:$28 sps:$4 sm:$0xff]  }
  0xf4   :  { %v147_v56 = vpop.f32.mrb[0].mxu1 }
  0xf5   :  { %v148_v57 = vadd.f32 %v2690_v55, %v147_v56  ;;  %v3075_v58 = vpop.f32.mrb[1].mxu1 }
  0xf6   :  { %v150_v59 = vpop.f32.mrb[2].mxu1 }
  0xf7   :  { %v151_v60 = vadd.f32 %v2690_v55, %v150_v59  ;;  %v3076_v61 = vpop.f32.mrb[3].mxu1  ;;  %v154_v62 = vmax.f32 %v148_v57, 0.0 }
  0xf8   :  { %v3239_v61 = vld [vmem:[%s4694_s7 + $0x8] ss:$28 sps:$4 sm:$0xff]  }
  0xf9   :  { %v155_v63 = vmax.f32 %v151_v60, 0.0  ;;  %v3236_v60 = vld [vmem:[%s4694_s7] ss:$28 sps:$4 sm:$0xff]  }
  0xfb   :  { %v156_v1 = vpack.c.bf16 %v155_v63, %v154_v62  ;;  %v3244_v62 = vld [vmem:[%s4694_s7 + $0x3c] ss:$28 sps:$4 sm:$0xff]   ;;  %v3247_v63 = vld [vmem:[%s4694_s7 + $0x44] ss:$28 sps:$4 sm:$0xff]  }
  0xfd   :  { %298 = vmatmul.mubr.bf16.vlgmr.msra.gmra.mrb[4].mxu1 %v156_v1  ;;  %v3245_v1 = vld [vmem:[%s4694_s7 + $0x40] ss:$28 sps:$4 sm:$0xff]  }
  0xfe   :  { %764 = vmatpush1.bf16.msra.mxu1 %v3142_v0  ;;  %v3242_v0 = vld [vmem:[%s4694_s7 + $0x38] ss:$28 sps:$4 sm:$0xff]  }
  0xff   :  { %765 = vmatprep.subr.bf16.mxu1 %v3150_v2  ;;  %v3250_v2 = vld [vmem:[%s4694_s7 + $0x74] ss:$28 sps:$4 sm:$0xff]  }
 0x102   :  { %766 = vmatpush1.bf16.msra.mxu1 %v3148_v3  ;;  %v3253_v3 = vld [vmem:[%s4694_s7 + $0x7c] ss:$28 sps:$4 sm:$0xff]  }
 0x103   :  { %767 = vmatprep.subr.bf16.mxu1 %v3156_v4  ;;  %v3248_v4 = vld [vmem:[%s4694_s7 + $0x70] ss:$28 sps:$4 sm:$0xff]  }
 0x106   :  { %768 = vmatpush1.bf16.msra.mxu1 %v3154_v5  ;;  %v3251_v5 = vld [vmem:[%s4694_s7 + $0x78] ss:$28 sps:$4 sm:$0xff]  }
 0x107   :  { %769 = vmatprep.subr.bf16.mxu1 %v3162_v6  ;;  %v3256_v6 = vld [vmem:[%s4694_s7 + $0xac] ss:$28 sps:$4 sm:$0xff]  }
 0x10a   :  { %770 = vmatpush1.bf16.msra.mxu1 %v3160_v7  ;;  %v3259_v7 = vld [vmem:[%s4694_s7 + $0xb4] ss:$28 sps:$4 sm:$0xff]  }
 0x10b   :  { %771 = vmatprep.subr.bf16.mxu1 %v3168_v8  ;;  %v3254_v8 = vld [vmem:[%s4694_s7 + $0xa8] ss:$28 sps:$4 sm:$0xff]  }
 0x10e   :  { %772 = vmatpush1.bf16.msra.mxu1 %v3166_v9  ;;  %v3257_v9 = vld [vmem:[%s4694_s7 + $0xb0] ss:$28 sps:$4 sm:$0xff]  }
 0x10f   :  { %773 = vmatprep.subr.bf16.mxu1 %v3174_v10  ;;  %v3262_v10 = vld [vmem:[%s4694_s7 + $0xe4] ss:$28 sps:$4 sm:$0xff]  }
 0x112   :  { %774 = vmatpush1.bf16.msra.mxu1 %v3172_v11  ;;  %v3265_v11 = vld [vmem:[%s4694_s7 + $0xec] ss:$28 sps:$4 sm:$0xff]  }
 0x113   :  { %775 = vmatprep.subr.bf16.mxu1 %v3180_v12  ;;  %v3260_v12 = vld [vmem:[%s4694_s7 + $0xe0] ss:$28 sps:$4 sm:$0xff]  }
 0x116   :  { %776 = vmatpush1.bf16.msra.mxu1 %v3178_v13  ;;  %v3263_v13 = vld [vmem:[%s4694_s7 + $0xe8] ss:$28 sps:$4 sm:$0xff]  }
 0x117   :  { %777 = vmatprep.subr.bf16.mxu1 %v3186_v14  ;;  %v3268_v14 = vld [vmem:[%s4694_s7 + $0x11c] ss:$28 sps:$4 sm:$0xff]  }
 0x11a   :  { %778 = vmatpush1.bf16.msra.mxu1 %v3184_v15  ;;  %v3271_v15 = vld [vmem:[%s4694_s7 + $0x124] ss:$28 sps:$4 sm:$0xff]  }
 0x11b   :  { %779 = vmatprep.subr.bf16.mxu1 %v3192_v16  ;;  %v3266_v16 = vld [vmem:[%s4694_s7 + $0x118] ss:$28 sps:$4 sm:$0xff]  }
 0x11e   :  { %780 = vmatpush1.bf16.msra.mxu1 %v3190_v17  ;;  %v3269_v17 = vld [vmem:[%s4694_s7 + $0x120] ss:$28 sps:$4 sm:$0xff]  }
 0x11f   :  { %781 = vmatprep.subr.bf16.mxu1 %v3198_v18  ;;  %v3274_v18 = vld [vmem:[%s4694_s7 + $0x154] ss:$28 sps:$4 sm:$0xff]  }
 0x122   :  { %782 = vmatpush1.bf16.msra.mxu1 %v3196_v19  ;;  %v3277_v19 = vld [vmem:[%s4694_s7 + $0x15c] ss:$28 sps:$4 sm:$0xff]  }
 0x123   :  { %783 = vmatprep.subr.bf16.mxu1 %v3204_v20  ;;  %v3272_v20 = vld [vmem:[%s4694_s7 + $0x150] ss:$28 sps:$4 sm:$0xff]  }
 0x126   :  { %784 = vmatpush1.bf16.msra.mxu1 %v3202_v21  ;;  %v3275_v21 = vld [vmem:[%s4694_s7 + $0x158] ss:$28 sps:$4 sm:$0xff]  }
 0x127   :  { %785 = vmatprep.subr.bf16.mxu1 %v3210_v22  ;;  %v3280_v22 = vld [vmem:[%s4694_s7 + $0x18c] ss:$28 sps:$4 sm:$0xff]  }
 0x12a   :  { %786 = vmatpush1.bf16.msra.mxu1 %v3208_v23  ;;  %v3283_v23 = vld [vmem:[%s4694_s7 + $0x194] ss:$28 sps:$4 sm:$0xff]  }
 0x12b   :  { %787 = vmatprep.subr.bf16.mxu1 %v3216_v24  ;;  %v3278_v24 = vld [vmem:[%s4694_s7 + $0x188] ss:$28 sps:$4 sm:$0xff]  }
 0x12e   :  { %788 = vmatpush1.bf16.msra.mxu1 %v3214_v25  ;;  %v3281_v25 = vld [vmem:[%s4694_s7 + $0x190] ss:$28 sps:$4 sm:$0xff]  }
 0x12f   :  { %789 = vmatprep.subr.bf16.mxu1 %v3222_v26  ;;  %v3286_v26 = vld [vmem:[%s4694_s7 + $0x1c4] ss:$28 sps:$4 sm:$0xff]  }
 0x132   :  { %790 = vmatpush1.bf16.msra.mxu1 %v3220_v27  ;;  %v3289_v27 = vld [vmem:[%s4694_s7 + $0x1cc] ss:$28 sps:$4 sm:$0xff]  }
 0x133   :  { %791 = vmatprep.subr.bf16.mxu1 %v3228_v30  ;;  %v3292_v30 = vld [vmem:[%s4694_s7 + $0x1fc] ss:$28 sps:$4 sm:$0xff]  }
 0x136   :  { %792 = vmatpush1.bf16.msra.mxu1 %v3226_v31  ;;  %v3295_v31 = vld [vmem:[%s4694_s7 + $0x204] ss:$28 sps:$4 sm:$0xff]  }
 0x137   :  { %793 = vmatprep.subr.bf16.mxu1 %v3234_v34  ;;  %v3298_v34 = vld [vmem:[%s4694_s7 + $0x234] ss:$28 sps:$4 sm:$0xff]  }
 0x13a   :  { %794 = vmatpush1.bf16.msra.mxu1 %v3232_v35  ;;  %v3301_v35 = vld [vmem:[%s4694_s7 + $0x23c] ss:$28 sps:$4 sm:$0xff]  }
 0x13b   :  { %2349 = vmatprep.subr.bf16.mxu1 %v3241_v38  ;;  %v3304_v38 = vld [vmem:[%s4694_s7 + $0x26c] ss:$28 sps:$4 sm:$0xff]  }
 0x1d0   :  { %v299_v46 = vpop.f32.mrb[4].mxu1 }
 0x1d1   :  { %v300_v47 = vadd.f32 %v299_v46, %v178_v44  ;;  %v301_v48 = vpop.f32.mrb[5].mxu1  ;;  %v3313_v46 = vld [vmem:[%s4694_s7 + $0x2ac] ss:$28 sps:$4 sm:$0xff]  }
 0x1d2   :  { %v302_v49 = vadd.f32 %v301_v48, %v182_v45  ;;  %v303_v50 = vpop.f32.mrb[6].mxu1  ;;  %v3311_v48 = vld [vmem:[%s4694_s7 + $0x2a8] ss:$28 sps:$4 sm:$0xff]  }
 0x1d3   :  { %v304_v51 = vadd.f32 %v303_v50, %v178_v44  ;;  %v305_v52 = vpop.f32.mrb[7].mxu1  ;;  %v308_v54 = vmax.f32 %v300_v47, 0.0  ;;  %v3305_v44 = vld [vmem:[%s4694_s7 + $0x270] ss:$28 sps:$4 sm:$0xff]   ;;  %v3308_v47 = vld [vmem:[%s4694_s7 + $0x2a0] ss:$28 sps:$4 sm:$0xff]  }
 0x1d4   :  { %v306_v53 = vadd.f32 %v305_v52, %v182_v45  ;;  %v309_v56 = vmax.f32 %v302_v49, 0.0  ;;  %v3310_v45 = vld [vmem:[%s4694_s7 + $0x2a4] ss:$28 sps:$4 sm:$0xff]   ;;  %v3316_v49 = vld [vmem:[%s4694_s7 + $0x2dc] ss:$28 sps:$4 sm:$0xff]  }
 0x1d5   :  { %v310_v55 = vmax.f32 %v304_v51, 0.0  ;;  %v3319_v50 = vld [vmem:[%s4694_s7 + $0x2e4] ss:$28 sps:$4 sm:$0xff]   ;;  %v3314_v51 = vld [vmem:[%s4694_s7 + $0x2d8] ss:$28 sps:$4 sm:$0xff]  }
 0x1d6   :  { %v311_v57 = vmax.f32 %v306_v53, 0.0  ;;  %v3317_v52 = vld [vmem:[%s4694_s7 + $0x2e0] ss:$28 sps:$4 sm:$0xff]   ;;  %v3322_v53 = vld [vmem:[%s4694_s7 + $0x314] ss:$28 sps:$4 sm:$0xff]  }
 0x1d7   :  { %v312_v58 = vpack.c.bf16 %v310_v55, %v308_v54  ;;  %v3325_v54 = vld [vmem:[%s4694_s7 + $0x31c] ss:$28 sps:$4 sm:$0xff]   ;;  %v3320_v55 = vld [vmem:[%s4694_s7 + $0x310] ss:$28 sps:$4 sm:$0xff]  }
 0x1d8   :  { %v313_v59 = vpack.c.bf16 %v311_v57, %v309_v56  ;;  %v3323_v56 = vld [vmem:[%s4694_s7 + $0x318] ss:$28 sps:$4 sm:$0xff]   ;;  %v3328_v57 = vld [vmem:[%s4694_s7 + $0x34c] ss:$28 sps:$4 sm:$0xff]  }
 0x1da   :  { %752 = vmatprep.mubr.bf16.mxu0 %v313_v59  ;;  %795 = vmatprep.mubr.bf16.mxu1 %v313_v59  ;;  %v3326_v59 = vld [vmem:[%s4694_s7 + $0x348] ss:$28 sps:$4 sm:$0xff]  }
 0x1db   :  { %753 = vmatmul.mubr.bf16.vlgmr.msra.gmra.mrb[0].mxu0 %v312_v58  ;;  %796 = vmatmul.mubr.bf16.vlgmr.msra.gmra.mrb[8].mxu1 %v312_v58  ;;  %v3331_v58 = vld [vmem:[%s4694_s7 + $0x354] ss:$28 sps:$4 sm:$0xff]  }
 0x1dc   :  { %2264 = vmatpush1.bf16.msra.mxu0 %v3236_v60  ;;  %2350 = vmatpush1.bf16.msra.mxu1 %v3239_v61  ;;  %v3329_v60 = vld [vmem:[%s4694_s7 + $0x350] ss:$28 sps:$4 sm:$0xff]   ;;  %v3334_v61 = vld [vmem:[%s4694_s7 + $0x384] ss:$28 sps:$4 sm:$0xff]  }
 0x1dd   :  { %2265 = vmatprep.subr.bf16.mxu0 %v3244_v62  ;;  %2351 = vmatprep.subr.bf16.mxu1 %v3247_v63  ;;  %v3337_v62 = vld [vmem:[%s4694_s7 + $0x38c] ss:$28 sps:$4 sm:$0xff]   ;;  %v390_v63 = vsub.s32 2, %v3940_v40 }
 0x1e0   :  { %2266 = vmatpush1.bf16.msra.mxu0 %v3242_v0  ;;  %2352 = vmatpush1.bf16.msra.mxu1 %v3245_v1  ;;  %v378_v0 = vld [vmem:[%s4693_s6] sm:$0xf]  ;;  %v394_v1 = vsub.s32 3, %v3940_v40 }
 0x1e1   :  { %2267 = vmatprep.subr.bf16.mxu0 %v3250_v2  ;;  %2353 = vmatprep.subr.bf16.mxu1 %v3253_v3  ;;  %v383_v2 = vrot.slane %v378_v0, %v3943_v41  ;;  %v391_v3 = vrot.slane %v378_v0, %v390_v63 }
 0x1e4   :  { %2268 = vmatpush1.bf16.msra.mxu0 %v3248_v4  ;;  %2354 = vmatpush1.bf16.msra.mxu1 %v3251_v5  ;;  %v387_v4 = vrot.slane %v378_v0, %v3949_v43  ;;  %v395_v5 = vrot.slane %v378_v0, %v394_v1  ;;  %v3376_v0 = vld [vmem:[%s4694_s7 + $0x50c] ss:$28 sps:$4 sm:$0xff]  }
 0x1e5   :  { %2269 = vmatprep.subr.bf16.mxu0 %v3256_v6  ;;  %2355 = vmatprep.subr.bf16.mxu1 %v3259_v7 }
 0x1e8   :  { %2270 = vmatpush1.bf16.msra.mxu0 %v3254_v8  ;;  %2356 = vmatpush1.bf16.msra.mxu1 %v3257_v9 }
 0x1e9   :  { %2271 = vmatprep.subr.bf16.mxu0 %v3262_v10  ;;  %2357 = vmatprep.subr.bf16.mxu1 %v3265_v11 }
 0x1ec   :  { %2272 = vmatpush1.bf16.msra.mxu0 %v3260_v12  ;;  %2358 = vmatpush1.bf16.msra.mxu1 %v3263_v13 }
 0x1ed   :  { %2273 = vmatprep.subr.bf16.mxu0 %v3268_v14  ;;  %2359 = vmatprep.subr.bf16.mxu1 %v3271_v15 }
 0x1f0   :  { %2274 = vmatpush1.bf16.msra.mxu0 %v3266_v16  ;;  %2360 = vmatpush1.bf16.msra.mxu1 %v3269_v17 }
 0x1f1   :  { %2275 = vmatprep.subr.bf16.mxu0 %v3274_v18  ;;  %2361 = vmatprep.subr.bf16.mxu1 %v3277_v19 }
 0x1f4   :  { %2276 = vmatpush1.bf16.msra.mxu0 %v3272_v20  ;;  %2362 = vmatpush1.bf16.msra.mxu1 %v3275_v21 }
 0x1f5   :  { %2277 = vmatprep.subr.bf16.mxu0 %v3280_v22  ;;  %2363 = vmatprep.subr.bf16.mxu1 %v3283_v23 }
 0x1f8   :  { %2278 = vmatpush1.bf16.msra.mxu0 %v3278_v24  ;;  %2364 = vmatpush1.bf16.msra.mxu1 %v3281_v25 }
 0x1f9   :  { %2279 = vmatprep.subr.bf16.mxu0 %v3286_v26  ;;  %2365 = vmatprep.subr.bf16.mxu1 %v3289_v27 }
 0x1fc   :  { %2280 = vmatpush1.bf16.msra.mxu0 %v3284_v28  ;;  %2366 = vmatpush1.bf16.msra.mxu1 %v3287_v29 }
 0x1fd   :  { %2281 = vmatprep.subr.bf16.mxu0 %v3292_v30  ;;  %2367 = vmatprep.subr.bf16.mxu1 %v3295_v31 }
 0x200   :  { %2282 = vmatpush1.bf16.msra.mxu0 %v3290_v32  ;;  %2368 = vmatpush1.bf16.msra.mxu1 %v3293_v33 }
 0x201   :  { %2283 = vmatprep.subr.bf16.mxu0 %v3298_v34  ;;  %2369 = vmatprep.subr.bf16.mxu1 %v3301_v35  ;;  %v3332_v34 = vld [vmem:[%s4694_s7 + $0x380] ss:$28 sps:$4 sm:$0xff]   ;;  %v3335_v35 = vld [vmem:[%s4694_s7 + $0x388] ss:$28 sps:$4 sm:$0xff]  }
 0x204   :  { %2284 = vmatpush1.bf16.msra.mxu0 %v3296_v36  ;;  %2370 = vmatpush1.bf16.msra.mxu1 %v3299_v37  ;;  %v3340_v36 = vld [vmem:[%s4694_s7 + $0x3bc] ss:$28 sps:$4 sm:$0xff]   ;;  %v3343_v37 = vld [vmem:[%s4694_s7 + $0x3c4] ss:$28 sps:$4 sm:$0xff]  }
 0x205   :  { %2285 = vmatprep.subr.bf16.mxu0 %v3304_v38  ;;  %2371 = vmatprep.subr.bf16.mxu1 %v3307_v39  ;;  %v3338_v38 = vld [vmem:[%s4694_s7 + $0x3b8] ss:$28 sps:$4 sm:$0xff]   ;;  %v3341_v39 = vld [vmem:[%s4694_s7 + $0x3c0] ss:$28 sps:$4 sm:$0xff]  }
 0x208   :  { %2286 = vmatpush1.bf16.msra.mxu0 %v3302_v42  ;;  %2372 = vmatpush1.bf16.msra.mxu1 %v3305_v44  ;;  %v3346_v42 = vld [vmem:[%s4694_s7 + $0x3f4] ss:$28 sps:$4 sm:$0xff]   ;;  %v3349_v44 = vld [vmem:[%s4694_s7 + $0x3fc] ss:$28 sps:$4 sm:$0xff]  }
 0x209   :  { %2287 = vmatprep.subr.bf16.mxu0 %v3310_v45  ;;  %2373 = vmatprep.subr.bf16.mxu1 %v3313_v46  ;;  %v3344_v45 = vld [vmem:[%s4694_s7 + $0x3f0] ss:$28 sps:$4 sm:$0xff]   ;;  %v3347_v46 = vld [vmem:[%s4694_s7 + $0x3f8] ss:$28 sps:$4 sm:$0xff]  }
 0x20c   :  { %2288 = vmatpush1.bf16.msra.mxu0 %v3308_v47  ;;  %2374 = vmatpush1.bf16.msra.mxu1 %v3311_v48  ;;  %v3352_v47 = vld [vmem:[%s4694_s7 + $0x42c] ss:$28 sps:$4 sm:$0xff]   ;;  %v3355_v48 = vld [vmem:[%s4694_s7 + $0x434] ss:$28 sps:$4 sm:$0xff]  }
 0x20d   :  { %2289 = vmatprep.subr.bf16.mxu0 %v3316_v49  ;;  %2375 = vmatprep.subr.bf16.mxu1 %v3319_v50  ;;  %v3350_v49 = vld [vmem:[%s4694_s7 + $0x428] ss:$28 sps:$4 sm:$0xff]   ;;  %v3353_v50 = vld [vmem:[%s4694_s7 + $0x430] ss:$28 sps:$4 sm:$0xff]  }
 0x210   :  { %2290 = vmatpush1.bf16.msra.mxu0 %v3314_v51  ;;  %2376 = vmatpush1.bf16.msra.mxu1 %v3317_v52  ;;  %v3358_v51 = vld [vmem:[%s4694_s7 + $0x464] ss:$28 sps:$4 sm:$0xff]   ;;  %v3361_v52 = vld [vmem:[%s4694_s7 + $0x46c] ss:$28 sps:$4 sm:$0xff]  }
 0x211   :  { %2291 = vmatprep.subr.bf16.mxu0 %v3322_v53  ;;  %2377 = vmatprep.subr.bf16.mxu1 %v3325_v54  ;;  %v3356_v53 = vld [vmem:[%s4694_s7 + $0x460] ss:$28 sps:$4 sm:$0xff]   ;;  %v3359_v54 = vld [vmem:[%s4694_s7 + $0x468] ss:$28 sps:$4 sm:$0xff]  }
 0x214   :  { %2292 = vmatpush1.bf16.msra.mxu0 %v3320_v55  ;;  %2378 = vmatpush1.bf16.msra.mxu1 %v3323_v56  ;;  %v3364_v55 = vld [vmem:[%s4694_s7 + $0x49c] ss:$28 sps:$4 sm:$0xff]   ;;  %v3367_v56 = vld [vmem:[%s4694_s7 + $0x4a4] ss:$28 sps:$4 sm:$0xff]  }
 0x215   :  { %2293 = vmatprep.subr.bf16.mxu0 %v3328_v57  ;;  %2379 = vmatprep.subr.bf16.mxu1 %v3331_v58  ;;  %v3362_v57 = vld [vmem:[%s4694_s7 + $0x498] ss:$28 sps:$4 sm:$0xff]   ;;  %v3365_v58 = vld [vmem:[%s4694_s7 + $0x4a0] ss:$28 sps:$4 sm:$0xff]  }
 0x218   :  { %2294 = vmatpush1.bf16.msra.mxu0 %v3326_v59  ;;  %2380 = vmatpush1.bf16.msra.mxu1 %v3329_v60  ;;  %v3370_v59 = vld [vmem:[%s4694_s7 + $0x4d4] ss:$28 sps:$4 sm:$0xff]   ;;  %v3373_v60 = vld [vmem:[%s4694_s7 + $0x4dc] ss:$28 sps:$4 sm:$0xff]  }
 0x219   :  { %2306 = vmatprep.subr.bf16.mxu0 %v3334_v61  ;;  %2392 = vmatprep.subr.bf16.mxu1 %v3337_v62  ;;  %v3368_v61 = vld [vmem:[%s4694_s7 + $0x4d0] ss:$28 sps:$4 sm:$0xff]   ;;  %v3371_v62 = vld [vmem:[%s4694_s7 + $0x4d8] ss:$28 sps:$4 sm:$0xff]  }
 0x2ae   :  { %v754_v6 = vpop.f32.mrb[0].mxu0  ;;  %v797_v7 = vpop.f32.mrb[8].mxu1 }
 0x2af   :  { %v755_v8 = vadd.f32 %v754_v6, %v383_v2  ;;  %v798_v9 = vadd.f32 %v797_v7, %v391_v3  ;;  %v756_v10 = vpop.f32.mrb[1].mxu0  ;;  %v799_v11 = vpop.f32.mrb[9].mxu1  ;;  %v3385_v6 = vld [vmem:[%s4694_s7 + $0x54c] ss:$28 sps:$4 sm:$0xff]   ;;  %v3380_v7 = vld [vmem:[%s4694_s7 + $0x540] ss:$28 sps:$4 sm:$0xff]  }
 0x2b0   :  { %v757_v12 = vadd.f32 %v756_v10, %v387_v4  ;;  %v800_v13 = vadd.f32 %v799_v11, %v395_v5  ;;  %v758_v14 = vpop.f32.mrb[2].mxu0  ;;  %v801_v15 = vpop.f32.mrb[10].mxu1  ;;  %v3391_v10 = vld [vmem:[%s4694_s7 + $0x584] ss:$28 sps:$4 sm:$0xff]   ;;  %v3386_v11 = vld [vmem:[%s4694_s7 + $0x578] ss:$28 sps:$4 sm:$0xff]  }
 0x2b1   :  { %v759_v16 = vadd.f32 %v758_v14, %v383_v2  ;;  %v802_v17 = vadd.f32 %v801_v15, %v391_v3  ;;  %v760_v18 = vpop.f32.mrb[3].mxu0  ;;  %v803_v19 = vpop.f32.mrb[11].mxu1  ;;  %v806_v22 = vmax.f32 %v755_v8, 0.0  ;;  %v808_v23 = vmax.f32 %v798_v9, 0.0  ;;  %v3379_v2 = vld [vmem:[%s4694_s7 + $0x514] ss:$28 sps:$4 sm:$0xff]  }
 0x2b2   :  { %v761_v20 = vadd.f32 %v760_v18, %v387_v4  ;;  %v804_v21 = vadd.f32 %v803_v19, %v395_v5  ;;  %v807_v26 = vmax.f32 %v757_v12, 0.0  ;;  %v809_v27 = vmax.f32 %v800_v13, 0.0  ;;  %v3374_v3 = vld [vmem:[%s4694_s7 + $0x508] ss:$28 sps:$4 sm:$0xff]   ;;  %v3377_v4 = vld [vmem:[%s4694_s7 + $0x510] ss:$28 sps:$4 sm:$0xff]  }
 0x2b3   :  { %v810_v24 = vmax.f32 %v759_v16, 0.0  ;;  %v812_v25 = vmax.f32 %v802_v17, 0.0  ;;  %v3382_v5 = vld [vmem:[%s4694_s7 + $0x544] ss:$28 sps:$4 sm:$0xff]   ;;  %v3388_v9 = vld [vmem:[%s4694_s7 + $0x57c] ss:$28 sps:$4 sm:$0xff]  }
 0x2b4   :  { %v811_v28 = vmax.f32 %v761_v20, 0.0  ;;  %v813_v29 = vmax.f32 %v804_v21, 0.0  ;;  %v3383_v8 = vld [vmem:[%s4694_s7 + $0x548] ss:$28 sps:$4 sm:$0xff]   ;;  %v3389_v12 = vld [vmem:[%s4694_s7 + $0x580] ss:$28 sps:$4 sm:$0xff]  }
 0x2b5   :  { %v4156_v30 = vpack.c.bf16 %v810_v24, %v806_v22  ;;  %v4158_v31 = vpack.c.bf16 %v812_v25, %v808_v23  ;;  %v3394_v13 = vld [vmem:[%s4694_s7 + $0x5b4] ss:$28 sps:$4 sm:$0xff]   ;;  %v3397_v14 = vld [vmem:[%s4694_s7 + $0x5bc] ss:$28 sps:$4 sm:$0xff]   ;;  %v3400_v17 = vld [vmem:[%s4694_s7 + $0x5ec] ss:$28 sps:$4 sm:$0xff]  }
 0x2b6   :  { %v4160_v32 = vpack.c.bf16 %v811_v28, %v807_v26  ;;  %v4162_v33 = vpack.c.bf16 %v813_v29, %v809_v27  ;;  %v3392_v15 = vld [vmem:[%s4694_s7 + $0x5b0] ss:$28 sps:$4 sm:$0xff]   ;;  %v3395_v16 = vld [vmem:[%s4694_s7 + $0x5b8] ss:$28 sps:$4 sm:$0xff]   ;;  %v3398_v19 = vld [vmem:[%s4694_s7 + $0x5e8] ss:$28 sps:$4 sm:$0xff]  }
 0x2b7   :  { %v3403_v18 = vld [vmem:[%s4694_s7 + $0x5f4] ss:$28 sps:$4 sm:$0xff]   ;;  %v3406_v21 = vld [vmem:[%s4694_s7 + $0x624] ss:$28 sps:$4 sm:$0xff]   ;;  %v3409_v22 = vld [vmem:[%s4694_s7 + $0x62c] ss:$28 sps:$4 sm:$0xff]  }
 0x2b8   :  { %2295 = vmatprep.mubr.bf16.mxu0 %v4160_v32  ;;  %2381 = vmatprep.mubr.bf16.mxu1 %v4160_v32  ;;  %v3401_v20 = vld [vmem:[%s4694_s7 + $0x5f0] ss:$28 sps:$4 sm:$0xff]   ;;  %v3404_v23 = vld [vmem:[%s4694_s7 + $0x620] ss:$28 sps:$4 sm:$0xff]   ;;  %v3407_v24 = vld [vmem:[%s4694_s7 + $0x628] ss:$28 sps:$4 sm:$0xff]  }
 0x2b9   :  { %2296 = vmatmul.mubr.bf16.vlgmr.msra.gmra.mrb[4].mxu0 %v4156_v30  ;;  %2382 = vmatmul.mubr.bf16.vlgmr.msra.gmra.mrb[12].mxu1 %v4156_v30  ;;  %v3412_v25 = vld [vmem:[%s4694_s7 + $0x65c] ss:$28 sps:$4 sm:$0xff]   ;;  %v3415_v26 = vld [vmem:[%s4694_s7 + $0x664] ss:$28 sps:$4 sm:$0xff]   ;;  %v3418_v29 = vld [vmem:[%s4694_s7 + $0x694] ss:$28 sps:$4 sm:$0xff]  }
 0x2ba   :  { %2307 = vmatpush1.bf16.msra.mxu0 %v3332_v34  ;;  %2393 = vmatpush1.bf16.msra.mxu1 %v3335_v35  ;;  %v3410_v27 = vld [vmem:[%s4694_s7 + $0x658] ss:$28 sps:$4 sm:$0xff]   ;;  %v3413_v28 = vld [vmem:[%s4694_s7 + $0x660] ss:$28 sps:$4 sm:$0xff]   ;;  %v3416_v35 = vld [vmem:[%s4694_s7 + $0x690] ss:$28 sps:$4 sm:$0xff]  }
 0x2bb   :  { %2338 = vmatprep.mubr.bf16.mxu0 %v4162_v33  ;;  %2424 = vmatprep.mubr.bf16.mxu1 %v4162_v33  ;;  %v3421_v34 = vld [vmem:[%s4694_s7 + $0x69c] ss:$28 sps:$4 sm:$0xff]  }
 0x2bc   :  { %2308 = vmatprep.subr.bf16.mxu0 %v3340_v36  ;;  %2394 = vmatprep.subr.bf16.mxu1 %v3343_v37  ;;  %v3419_v36 = vld [vmem:[%s4694_s7 + $0x698] ss:$28 sps:$4 sm:$0xff]   ;;  %v3424_v37 = vld [vmem:[%s4694_s7 + $0x6cc] ss:$28 sps:$4 sm:$0xff]  }
 0x2be   :  { %2309 = vmatpush1.bf16.msra.mxu0 %v3338_v38  ;;  %2395 = vmatpush1.bf16.msra.mxu1 %v3341_v39  ;;  %v3427_v38 = vld [vmem:[%s4694_s7 + $0x6d4] ss:$28 sps:$4 sm:$0xff]   ;;  %v3422_v39 = vld [vmem:[%s4694_s7 + $0x6c8] ss:$28 sps:$4 sm:$0xff]  }
 0x2bf   :  { %2310 = vmatprep.subr.bf16.mxu0 %v3346_v42  ;;  %2396 = vmatprep.subr.bf16.mxu1 %v3349_v44  ;;  %v3425_v42 = vld [vmem:[%s4694_s7 + $0x6d0] ss:$28 sps:$4 sm:$0xff]  }
 0x2c0   :  { %v3430_v44 = vld [vmem:[%s4694_s7 + $0x14] ss:$28 sps:$4 sm:$0xff]  }
 0x2c2   :  { %2311 = vmatpush1.bf16.msra.mxu0 %v3344_v45  ;;  %2397 = vmatpush1.bf16.msra.mxu1 %v3347_v46  ;;  %v3431_v45 = vld [vmem:[%s4694_s7 + $0x1d8] ss:$28 sps:$4 sm:$0xff]   ;;  %v3428_v46 = vld [vmem:[%s4694_s7 + $0x10] ss:$28 sps:$4 sm:$0xff]  }
 0x2c3   :  { %2312 = vmatprep.subr.bf16.mxu0 %v3352_v47  ;;  %2398 = vmatprep.subr.bf16.mxu1 %v3355_v48  ;;  %v3432_v47 = vld [vmem:[%s4694_s7 + $0x18] ss:$28 sps:$4 sm:$0xff]   ;;  %v3435_v48 = vld [vmem:[%s4694_s7 + $0x4c] ss:$28 sps:$4 sm:$0xff]  }
 0x2c6   :  { %2313 = vmatpush1.bf16.msra.mxu0 %v3350_v49  ;;  %2399 = vmatpush1.bf16.msra.mxu1 %v3353_v50  ;;  %v3436_v49 = vld [vmem:[%s4694_s7 + $0x210] ss:$28 sps:$4 sm:$0xff]   ;;  %v3433_v50 = vld [vmem:[%s4694_s7 + $0x48] ss:$28 sps:$4 sm:$0xff]  }
 0x2c7   :  { %2314 = vmatprep.subr.bf16.mxu0 %v3358_v51  ;;  %2400 = vmatprep.subr.bf16.mxu1 %v3361_v52  ;;  %v3437_v51 = vld [vmem:[%s4694_s7 + $0x50] ss:$28 sps:$4 sm:$0xff]   ;;  %v3440_v52 = vld [vmem:[%s4694_s7 + $0x84] ss:$28 sps:$4 sm:$0xff]  }
 0x2ca   :  { %2315 = vmatpush1.bf16.msra.mxu0 %v3356_v53  ;;  %2401 = vmatpush1.bf16.msra.mxu1 %v3359_v54  ;;  %v3441_v53 = vld [vmem:[%s4694_s7 + $0x248] ss:$28 sps:$4 sm:$0xff]   ;;  %v3438_v54 = vld [vmem:[%s4694_s7 + $0x80] ss:$28 sps:$4 sm:$0xff]  }
 0x2cb   :  { %2316 = vmatprep.subr.bf16.mxu0 %v3364_v55  ;;  %2402 = vmatprep.subr.bf16.mxu1 %v3367_v56  ;;  %v3445_v55 = vld [vmem:[%s4694_s7 + $0xbc] ss:$28 sps:$4 sm:$0xff]  }
 0x2cc   :  { %v3446_v56 = vld [vmem:[%s4694_s7 + $0x280] ss:$28 sps:$4 sm:$0xff]  }
 0x2ce   :  { %2317 = vmatpush1.bf16.msra.mxu0 %v3362_v57  ;;  %2403 = vmatpush1.bf16.msra.mxu1 %v3365_v58  ;;  %v3443_v57 = vld [vmem:[%s4694_s7 + $0xb8] ss:$28 sps:$4 sm:$0xff]   ;;  %v3447_v58 = vld [vmem:[%s4694_s7 + $0xc0] ss:$28 sps:$4 sm:$0xff]  }
 0x2cf   :  { %2318 = vmatprep.subr.bf16.mxu0 %v3370_v59  ;;  %2404 = vmatprep.subr.bf16.mxu1 %v3373_v60  ;;  %v3450_v59 = vld [vmem:[%s4694_s7 + $0xf4] ss:$28 sps:$4 sm:$0xff]  }
 0x2d0   :  { %v3451_v60 = vld [vmem:[%s4694_s7 + $0x2b8] ss:$28 sps:$4 sm:$0xff]  }
 0x2d2   :  { %2319 = vmatpush1.bf16.msra.mxu0 %v3368_v61  ;;  %2405 = vmatpush1.bf16.msra.mxu1 %v3371_v62  ;;  %v3448_v61 = vld [vmem:[%s4694_s7 + $0xf0] ss:$28 sps:$4 sm:$0xff]   ;;  %v3452_v62 = vld [vmem:[%s4694_s7 + $0xf8] ss:$28 sps:$4 sm:$0xff]  }
 0x2d3   :  { %2320 = vmatprep.subr.bf16.mxu0 %v3376_v0  ;;  %2406 = vmatprep.subr.bf16.mxu1 %v3379_v2  ;;  %v3455_v0 = vld [vmem:[%s4694_s7 + $0x12c] ss:$28 sps:$4 sm:$0xff]  }
 0x2d4   :  { %v3456_v2 = vld [vmem:[%s4694_s7 + $0x2f0] ss:$28 sps:$4 sm:$0xff]  }
 0x2d6   :  { %2321 = vmatpush1.bf16.msra.mxu0 %v3374_v3  ;;  %2407 = vmatpush1.bf16.msra.mxu1 %v3377_v4  ;;  %v3453_v3 = vld [vmem:[%s4694_s7 + $0x128] ss:$28 sps:$4 sm:$0xff]   ;;  %v3457_v4 = vld [vmem:[%s4694_s7 + $0x130] ss:$28 sps:$4 sm:$0xff]  }
 0x2d7   :  { %2322 = vmatprep.subr.bf16.mxu0 %v3382_v5  ;;  %2408 = vmatprep.subr.bf16.mxu1 %v3385_v6  ;;  %v3460_v5 = vld [vmem:[%s4694_s7 + $0x164] ss:$28 sps:$4 sm:$0xff]  }
 0x2d8   :  { %v3461_v6 = vld [vmem:[%s4694_s7 + $0x328] ss:$28 sps:$4 sm:$0xff]  }
 0x2da   :  { %2323 = vmatpush1.bf16.msra.mxu0 %v3380_v7  ;;  %2409 = vmatpush1.bf16.msra.mxu1 %v3383_v8  ;;  %v3458_v7 = vld [vmem:[%s4694_s7 + $0x160] ss:$28 sps:$4 sm:$0xff]   ;;  %v3462_v8 = vld [vmem:[%s4694_s7 + $0x168] ss:$28 sps:$4 sm:$0xff]  }
 0x2db   :  { %2324 = vmatprep.subr.bf16.mxu0 %v3388_v9  ;;  %2410 = vmatprep.subr.bf16.mxu1 %v3391_v10  ;;  %v3465_v9 = vld [vmem:[%s4694_s7 + $0x19c] ss:$28 sps:$4 sm:$0xff]  }
 0x2dc   :  { %v3466_v10 = vld [vmem:[%s4694_s7 + $0x360] ss:$28 sps:$4 sm:$0xff]  }
 0x2de   :  { %2325 = vmatpush1.bf16.msra.mxu0 %v3386_v11  ;;  %2411 = vmatpush1.bf16.msra.mxu1 %v3389_v12  ;;  %v3463_v11 = vld [vmem:[%s4694_s7 + $0x198] ss:$28 sps:$4 sm:$0xff]   ;;  %v3467_v12 = vld [vmem:[%s4694_s7 + $0x1a0] ss:$28 sps:$4 sm:$0xff]  }
 0x2df   :  { %2326 = vmatprep.subr.bf16.mxu0 %v3394_v13  ;;  %2412 = vmatprep.subr.bf16.mxu1 %v3397_v14  ;;  %v3470_v13 = vld [vmem:[%s4694_s7 + $0x1d4] ss:$28 sps:$4 sm:$0xff]  }
 0x2e0   :  { %v3471_v14 = vld [vmem:[%s4694_s7 + $0x558] ss:$28 sps:$4 sm:$0xff]  }
 0x2e2   :  { %2327 = vmatpush1.bf16.msra.mxu0 %v3392_v15  ;;  %2413 = vmatpush1.bf16.msra.mxu1 %v3395_v16  ;;  %v3468_v15 = vld [vmem:[%s4694_s7 + $0x1d0] ss:$28 sps:$4 sm:$0xff]   ;;  %v3472_v16 = vld [vmem:[%s4694_s7 + $0x398] ss:$28 sps:$4 sm:$0xff]  }
 0x2e3   :  { %2328 = vmatprep.subr.bf16.mxu0 %v3400_v17  ;;  %2414 = vmatprep.subr.bf16.mxu1 %v3403_v18  ;;  %v3475_v17 = vld [vmem:[%s4694_s7 + $0x20c] ss:$28 sps:$4 sm:$0xff]  }
 0x2e4   :  { %v3476_v18 = vld [vmem:[%s4694_s7 + $0x590] ss:$28 sps:$4 sm:$0xff]  }
 0x2e6   :  { %2329 = vmatpush1.bf16.msra.mxu0 %v3398_v19  ;;  %2415 = vmatpush1.bf16.msra.mxu1 %v3401_v20  ;;  %v3473_v19 = vld [vmem:[%s4694_s7 + $0x208] ss:$28 sps:$4 sm:$0xff]   ;;  %v3477_v20 = vld [vmem:[%s4694_s7 + $0x3d0] ss:$28 sps:$4 sm:$0xff]  }
 0x2e7   :  { %2330 = vmatprep.subr.bf16.mxu0 %v3406_v21  ;;  %2416 = vmatprep.subr.bf16.mxu1 %v3409_v22  ;;  %v3480_v21 = vld [vmem:[%s4694_s7 + $0x244] ss:$28 sps:$4 sm:$0xff]  }
 0x2e8   :  { %v3481_v22 = vld [vmem:[%s4694_s7 + $0x5c8] ss:$28 sps:$4 sm:$0xff]  }
 0x2ea   :  { %2331 = vmatpush1.bf16.msra.mxu0 %v3404_v23  ;;  %2417 = vmatpush1.bf16.msra.mxu1 %v3407_v24  ;;  %v3478_v23 = vld [vmem:[%s4694_s7 + $0x240] ss:$28 sps:$4 sm:$0xff]   ;;  %v3482_v24 = vld [vmem:[%s4694_s7 + $0x408] ss:$28 sps:$4 sm:$0xff]  }
 0x2eb   :  { %2332 = vmatprep.subr.bf16.mxu0 %v3412_v25  ;;  %2418 = vmatprep.subr.bf16.mxu1 %v3415_v26  ;;  %v3485_v25 = vld [vmem:[%s4694_s7 + $0x27c] ss:$28 sps:$4 sm:$0xff]  }
 0x2ec   :  { %v3486_v26 = vld [vmem:[%s4694_s7 + $0x600] ss:$28 sps:$4 sm:$0xff]  }
 0x2ee   :  { %2333 = vmatpush1.bf16.msra.mxu0 %v3410_v27  ;;  %2419 = vmatpush1.bf16.msra.mxu1 %v3413_v28  ;;  %v3483_v27 = vld [vmem:[%s4694_s7 + $0x278] ss:$28 sps:$4 sm:$0xff]   ;;  %v3487_v28 = vld [vmem:[%s4694_s7 + $0x440] ss:$28 sps:$4 sm:$0xff]  }
 0x2ef   :  { %2334 = vmatprep.subr.bf16.mxu0 %v3418_v29  ;;  %2420 = vmatprep.subr.bf16.mxu1 %v3421_v34  ;;  %v3490_v29 = vld [vmem:[%s4694_s7 + $0x2b4] ss:$28 sps:$4 sm:$0xff]  }
 0x2f0   :  { %v3491_v34 = vld [vmem:[%s4694_s7 + $0x638] ss:$28 sps:$4 sm:$0xff]  }
 0x2f2   :  { %2335 = vmatpush1.bf16.msra.mxu0 %v3416_v35  ;;  %2421 = vmatpush1.bf16.msra.mxu1 %v3419_v36  ;;  %v3488_v35 = vld [vmem:[%s4694_s7 + $0x2b0] ss:$28 sps:$4 sm:$0xff]   ;;  %v3492_v36 = vld [vmem:[%s4694_s7 + $0x478] ss:$28 sps:$4 sm:$0xff]  }
 0x2f3   :  { %2336 = vmatprep.subr.bf16.mxu0 %v3424_v37  ;;  %2422 = vmatprep.subr.bf16.mxu1 %v3427_v38  ;;  %v3495_v37 = vld [vmem:[%s4694_s7 + $0x2ec] ss:$28 sps:$4 sm:$0xff]  }
 0x2f4   :  { %v3496_v38 = vld [vmem:[%s4694_s7 + $0x670] ss:$28 sps:$4 sm:$0xff]  }
 0x2f6   :  { %2337 = vmatpush1.bf16.msra.mxu0 %v3422_v39  ;;  %2423 = vmatpush1.bf16.msra.mxu1 %v3425_v42  ;;  %v3493_v39 = vld [vmem:[%s4694_s7 + $0x2e8] ss:$28 sps:$4 sm:$0xff]   ;;  %v3497_v42 = vld [vmem:[%s4694_s7 + $0x4b0] ss:$28 sps:$4 sm:$0xff]  }
 0x2f7   :  { %2435 = vmatprep.subr.bf16.mxu0 %v3430_v44  ;;  %3013 = vmatprep.subr.bf16.mxu1 %v3431_v45  ;;  %v3500_v44 = vld [vmem:[%s4694_s7 + $0x324] ss:$28 sps:$4 sm:$0xff]  }
 0x2f8   :  { %v3501_v45 = vld [vmem:[%s4694_s7 + $0x6a8] ss:$28 sps:$4 sm:$0xff]  }
 0x2f9   :  { %2339 = vmatmul.mubr.bf16.vlgmr.msra.gmra.mrb[4].mxu0 %v4158_v31  ;;  %2425 = vmatmul.mubr.bf16.vlgmr.msra.gmra.mrb[12].mxu1 %v4158_v31 }
 0x2fa   :  { %2436 = vmatpush1.bf16.msra.mxu0 %v3428_v46  ;;  %2467 = vmatprep.mubr.bf16.mxu0 %v4160_v32  ;;  %v3498_v46 = vld [vmem:[%s4694_s7 + $0x320] ss:$28 sps:$4 sm:$0xff]  }
 0x2fb   :  { %3014 = vmatpush3.bf16.msra.mxu1 %v3432_v47  ;;  %2553 = vmatprep.mubr.bf16.mxu1 %v4160_v32  ;;  %v3442_v32 = vld [vmem:[%s4694_s7 + $0x88] ss:$28 sps:$4 sm:$0xff]  }
 0x2fc   :  { %2437 = vmatprep.subr.bf16.mxu0 %v3435_v48  ;;  %3015 = vmatprep.subr.bf16.mxu1 %v3436_v49  ;;  %v3502_v47 = vld [vmem:[%s4694_s7 + $0x4e8] ss:$28 sps:$4 sm:$0xff]   ;;  %v3505_v48 = vld [vmem:[%s4694_s7 + $0x35c] ss:$28 sps:$4 sm:$0xff]  }
 0x2fd   :  { %v3506_v49 = vld [vmem:[%s4694_s7 + $0x6e0] ss:$28 sps:$4 sm:$0xff]  }
 0x2fe   :  { %2438 = vmatpush1.bf16.msra.mxu0 %v3433_v50  ;;  %v3503_v50 = vld [vmem:[%s4694_s7 + $0x358] ss:$28 sps:$4 sm:$0xff]  }
 0x2ff   :  { %3016 = vmatpush3.bf16.msra.mxu1 %v3437_v51  ;;  %2439 = vmatprep.subr.bf16.mxu0 %v3440_v52  ;;  %v3507_v51 = vld [vmem:[%s4694_s7 + $0x520] ss:$28 sps:$4 sm:$0xff]   ;;  %v3510_v52 = vld [vmem:[%s4694_s7 + $0x394] ss:$28 sps:$4 sm:$0xff]  }
 0x300   :  { %3017 = vmatprep.subr.bf16.mxu1 %v3441_v53  ;;  %v3508_v53 = vld [vmem:[%s4694_s7 + $0x390] ss:$28 sps:$4 sm:$0xff]  }
 0x302   :  { %2440 = vmatpush1.bf16.msra.mxu0 %v3438_v54  ;;  %v3513_v54 = vld [vmem:[%s4694_s7 + $0x3cc] ss:$28 sps:$4 sm:$0xff]  }
 0x303   :  { %3018 = vmatpush3.bf16.msra.mxu1 %v3442_v32  ;;  %2441 = vmatprep.subr.bf16.mxu0 %v3445_v55  ;;  %v3511_v32 = vld [vmem:[%s4694_s7 + $0x3c8] ss:$28 sps:$4 sm:$0xff]  }
 0x304   :  { %3019 = vmatprep.subr.bf16.mxu1 %v3446_v56  ;;  %v3516_v55 = vld [vmem:[%s4694_s7 + $0x404] ss:$28 sps:$4 sm:$0xff]  }
 0x305   :  { %v3514_v56 = vld [vmem:[%s4694_s7 + $0x400] ss:$28 sps:$4 sm:$0xff]  }
 0x306   :  { %2442 = vmatpush1.bf16.msra.mxu0 %v3443_v57  ;;  %v3522_v57 = vld [vmem:[%s4694_s7 + $0x474] ss:$28 sps:$4 sm:$0xff]  }
 0x307   :  { %3020 = vmatpush3.bf16.msra.mxu1 %v3447_v58  ;;  %2443 = vmatprep.subr.bf16.mxu0 %v3450_v59  ;;  %v3520_v58 = vld [vmem:[%s4694_s7 + $0x470] ss:$28 sps:$4 sm:$0xff]  }
 0x308   :  { %3021 = vmatprep.subr.bf16.mxu1 %v3451_v60  ;;  %v3525_v59 = vld [vmem:[%s4694_s7 + $0x4ac] ss:$28 sps:$4 sm:$0xff]  }
 0x309   :  { %v3523_v60 = vld [vmem:[%s4694_s7 + $0x4a8] ss:$28 sps:$4 sm:$0xff]  }
 0x30a   :  { %2444 = vmatpush1.bf16.msra.mxu0 %v3448_v61  ;;  %v3528_v61 = vld [vmem:[%s4694_s7 + $0x4e4] ss:$28 sps:$4 sm:$0xff]  }
 0x30b   :  { %3022 = vmatpush3.bf16.msra.mxu1 %v3452_v62  ;;  %2445 = vmatprep.subr.bf16.mxu0 %v3455_v0  ;;  %v3526_v62 = vld [vmem:[%s4694_s7 + $0x4e0] ss:$28 sps:$4 sm:$0xff]  }
 0x30c   :  { %3023 = vmatprep.subr.bf16.mxu1 %v3456_v2  ;;  %v3531_v0 = vld [vmem:[%s4694_s7 + $0x51c] ss:$28 sps:$4 sm:$0xff]  }
 0x30d   :  { %v3529_v2 = vld [vmem:[%s4694_s7 + $0x518] ss:$28 sps:$4 sm:$0xff]  }
 0x30e   :  { %2446 = vmatpush1.bf16.msra.mxu0 %v3453_v3  ;;  %v3534_v3 = vld [vmem:[%s4694_s7 + $0x554] ss:$28 sps:$4 sm:$0xff]  }
 0x30f   :  { %3024 = vmatpush3.bf16.msra.mxu1 %v3457_v4  ;;  %2447 = vmatprep.subr.bf16.mxu0 %v3460_v5  ;;  %v3532_v4 = vld [vmem:[%s4694_s7 + $0x550] ss:$28 sps:$4 sm:$0xff]  }
 0x310   :  { %3025 = vmatprep.subr.bf16.mxu1 %v3461_v6  ;;  %v3537_v5 = vld [vmem:[%s4694_s7 + $0x58c] ss:$28 sps:$4 sm:$0xff]  }
 0x311   :  { %v3535_v6 = vld [vmem:[%s4694_s7 + $0x588] ss:$28 sps:$4 sm:$0xff]  }
 0x312   :  { %2448 = vmatpush1.bf16.msra.mxu0 %v3458_v7  ;;  %v3540_v7 = vld [vmem:[%s4694_s7 + $0x5c4] ss:$28 sps:$4 sm:$0xff]  }
 0x313   :  { %3026 = vmatpush3.bf16.msra.mxu1 %v3462_v8  ;;  %2449 = vmatprep.subr.bf16.mxu0 %v3465_v9  ;;  %v3538_v8 = vld [vmem:[%s4694_s7 + $0x5c0] ss:$28 sps:$4 sm:$0xff]  }
 0x314   :  { %3027 = vmatprep.subr.bf16.mxu1 %v3466_v10  ;;  %v3543_v9 = vld [vmem:[%s4694_s7 + $0x5fc] ss:$28 sps:$4 sm:$0xff]  }
 0x315   :  { %v3541_v10 = vld [vmem:[%s4694_s7 + $0x5f8] ss:$28 sps:$4 sm:$0xff]  }
 0x316   :  { %2450 = vmatpush1.bf16.msra.mxu0 %v3463_v11  ;;  %v3546_v11 = vld [vmem:[%s4694_s7 + $0x634] ss:$28 sps:$4 sm:$0xff]  }
 0x317   :  { %3028 = vmatpush3.bf16.msra.mxu1 %v3467_v12  ;;  %2451 = vmatprep.subr.bf16.mxu0 %v3470_v13  ;;  %v3544_v12 = vld [vmem:[%s4694_s7 + $0x630] ss:$28 sps:$4 sm:$0xff]  }
 0x318   :  { %3035 = vmatprep.subr.bf16.mxu1 %v3471_v14  ;;  %v3549_v13 = vld [vmem:[%s4694_s7 + $0x66c] ss:$28 sps:$4 sm:$0xff]  }
 0x319   :  { %v3547_v14 = vld [vmem:[%s4694_s7 + $0x668] ss:$28 sps:$4 sm:$0xff]  }
 0x31a   :  { %2554 = vmatmul.mubr.bf16.vlgmr.msra.gmra.mrb[16].mxu1 %v4156_v30  ;;  %2452 = vmatpush1.bf16.msra.mxu0 %v3468_v15  ;;  %v3552_v15 = vld [vmem:[%s4694_s7 + $0x6a4] ss:$28 sps:$4 sm:$0xff]  }
 0x31b   :  { %3036 = vmatpush3.bf16.msra.mxu1 %v3472_v16  ;;  %2594 = vmatprep.mubr.bf16.mxu1 %v4162_v33  ;;  %v3550_v16 = vld [vmem:[%s4694_s7 + $0x6a0] ss:$28 sps:$4 sm:$0xff]  }
 0x31c   :  { %2453 = vmatprep.subr.bf16.mxu0 %v3475_v17  ;;  %3037 = vmatprep.subr.bf16.mxu1 %v3476_v18  ;;  %v3555_v17 = vld [vmem:[%s4694_s7 + $0x6dc] ss:$28 sps:$4 sm:$0xff]  }
 0x31d   :  { %v3553_v18 = vld [vmem:[%s4694_s7 + $0x6d8] ss:$28 sps:$4 sm:$0xff]  }
 0x31e   :  { %2454 = vmatpush1.bf16.msra.mxu0 %v3473_v19  ;;  %v4657_v19 = vld [vmem:[%s4695_s8] sm:$0x7f] }
 0x31f   :  { %3038 = vmatpush3.bf16.msra.mxu1 %v3477_v20  ;;  %2455 = vmatprep.subr.bf16.mxu0 %v3480_v21  ;;  %v1079_v20 = vrot.slane %v4657_v19, %v3943_v41  ;;  %v1087_v21 = vrot.slane %v4657_v19, %v390_v63 }
 0x320   :  { %3039 = vmatprep.subr.bf16.mxu1 %v3481_v22  ;;  %v1083_v22 = vrot.slane %v4657_v19, %v3949_v43 }
 0x322   :  { %2456 = vmatpush1.bf16.msra.mxu0 %v3478_v23  ;;  %v1091_v23 = vrot.slane %v4657_v19, %v394_v1 }
 0x323   :  { %3040 = vmatpush3.bf16.msra.mxu1 %v3482_v24  ;;  %2457 = vmatprep.subr.bf16.mxu0 %v3485_v25 }
 0x324   :  { %3041 = vmatprep.subr.bf16.mxu1 %v3486_v26 }
 0x326   :  { %2458 = vmatpush1.bf16.msra.mxu0 %v3483_v27 }
 0x327   :  { %3042 = vmatpush3.bf16.msra.mxu1 %v3487_v28  ;;  %2459 = vmatprep.subr.bf16.mxu0 %v3490_v29 }
 0x328   :  { %3043 = vmatprep.subr.bf16.mxu1 %v3491_v34 }
 0x32a   :  { %2460 = vmatpush1.bf16.msra.mxu0 %v3488_v35 }
 0x32b   :  { %3044 = vmatpush3.bf16.msra.mxu1 %v3492_v36  ;;  %2461 = vmatprep.subr.bf16.mxu0 %v3495_v37 }
 0x32c   :  { %3045 = vmatprep.subr.bf16.mxu1 %v3496_v38 }
 0x32e   :  { %2462 = vmatpush1.bf16.msra.mxu0 %v3493_v39 }
 0x32f   :  { %3046 = vmatpush3.bf16.msra.mxu1 %v3497_v42  ;;  %2463 = vmatprep.subr.bf16.mxu0 %v3500_v44 }
 0x330   :  { %3047 = vmatprep.subr.bf16.mxu1 %v3501_v45 }
 0x332   :  { %2464 = vmatpush1.bf16.msra.mxu0 %v3498_v46 }
 0x333   :  { %3048 = vmatpush3.bf16.msra.mxu1 %v3502_v47  ;;  %2465 = vmatprep.subr.bf16.mxu0 %v3505_v48 }
 0x334   :  { %3049 = vmatprep.subr.bf16.mxu1 %v3506_v49 }
 0x336   :  { %2466 = vmatpush1.bf16.msra.mxu0 %v3503_v50 }
 0x337   :  { %3050 = vmatpush3.bf16.msra.mxu1 %v3507_v51  ;;  %2478 = vmatprep.subr.bf16.mxu0 %v3510_v52 }
 0x339   :  { %2468 = vmatmul.mubr.bf16.vlgmr.msra.gmra.mrb[8].mxu0 %v4156_v30  ;;  %v3519_v30 = vld [vmem:[%s4694_s7 + $0x43c] ss:$28 sps:$4 sm:$0xff]  }
 0x33a   :  { %2595 = vmatmul.mubr.bf16.vlgmr.msra.gmra.mrb[20].mxu1 %v4158_v31  ;;  %2479 = vmatpush1.bf16.msra.mxu0 %v3508_v53 }
 0x33b   :  { %2510 = vmatprep.mubr.bf16.mxu0 %v4162_v33  ;;  %2480 = vmatprep.subr.bf16.mxu0 %v3513_v54  ;;  %v3517_v33 = vld [vmem:[%s4694_s7 + $0x438] ss:$28 sps:$4 sm:$0xff]   ;;  %s3611_s7 = smov [#allocation2]  }
 0x33c   :  { %s2679_s8 = sshll.u32 %s3611_s7, 4  ;;  %s2680_s8 = int_to_ptr.vmem [resolvable:$true] %s2679_s8 }
 0x33d   :  { %s3584_s26 = scalar_lea.vmem %s2680_s8, 1792  ;;  %p3589_p1 = scmp.lt.s32.totalorder %s2680_s8, %s2680_s8 }
 0x33e   :  { %2481 = vmatpush1.bf16.msra.mxu0 %v3511_v32  ;;  %p3585_p0 = scmp.ne.s32.totalorder %s2680_s8, %s3584_s26  ;;  %p3590_p2 = scmp.lt.s32.totalorder %s3584_s26, %s3584_s26 }
 0x33f   :  { %2482 = vmatprep.subr.bf16.mxu0 %v3516_v55 }
 0x340   :  { %p3591_p3 = por %p3590_p2, %p3589_p1 }
 0x342   :  { %2483 = vmatpush1.bf16.msra.mxu0 %v3514_v56  ;;  %p3592_p4 = pnand %p3591_p3, %p3585_p0 }
 0x343   :  { %2484 = vmatprep.subr.bf16.mxu0 %v3519_v30 }
 0x346   :  { %2485 = vmatpush1.bf16.msra.mxu0 %v3517_v33 }
 0x347   :  { %2486 = vmatprep.subr.bf16.mxu0 %v3522_v57 }
 0x34a   :  { %2487 = vmatpush1.bf16.msra.mxu0 %v3520_v58 }
 0x34b   :  { %2488 = vmatprep.subr.bf16.mxu0 %v3525_v59 }
 0x34e   :  { %2489 = vmatpush1.bf16.msra.mxu0 %v3523_v60 }
 0x34f   :  { %2490 = vmatprep.subr.bf16.mxu0 %v3528_v61 }
 0x352   :  { %2491 = vmatpush1.bf16.msra.mxu0 %v3526_v62 }
 0x353   :  { %2492 = vmatprep.subr.bf16.mxu0 %v3531_v0 }
 0x356   :  { %2493 = vmatpush1.bf16.msra.mxu0 %v3529_v2 }
 0x357   :  { %2494 = vmatprep.subr.bf16.mxu0 %v3534_v3 }
 0x35a   :  { %2495 = vmatpush1.bf16.msra.mxu0 %v3532_v4 }
 0x35b   :  { %2496 = vmatprep.subr.bf16.mxu0 %v3537_v5 }
 0x35e   :  { %2497 = vmatpush1.bf16.msra.mxu0 %v3535_v6 }
 0x35f   :  { %2498 = vmatprep.subr.bf16.mxu0 %v3540_v7 }
 0x362   :  { %2499 = vmatpush1.bf16.msra.mxu0 %v3538_v8 }
 0x363   :  { %2500 = vmatprep.subr.bf16.mxu0 %v3543_v9 }
 0x366   :  { %2501 = vmatpush1.bf16.msra.mxu0 %v3541_v10 }
 0x367   :  { %2502 = vmatprep.subr.bf16.mxu0 %v3546_v11 }
 0x36a   :  { %2503 = vmatpush1.bf16.msra.mxu0 %v3544_v12 }
 0x36b   :  { %2504 = vmatprep.subr.bf16.mxu0 %v3549_v13 }
 0x36e   :  { %2505 = vmatpush1.bf16.msra.mxu0 %v3547_v14 }
 0x36f   :  { %2506 = vmatprep.subr.bf16.mxu0 %v3552_v15  ;;  %v1102_v15 = vsub.s32 6, %v3940_v40 }
 0x372   :  { %2507 = vmatpush1.bf16.msra.mxu0 %v3550_v16  ;;  %v1103_v16 = vrot.slane %v4657_v19, %v1102_v15 }
 0x373   :  { %2508 = vmatprep.subr.bf16.mxu0 %v3555_v17 }
 0x376   :  { %2509 = vmatpush1.bf16.msra.mxu0 %v3553_v18 }
 0x379   :  { %2511 = vmatmul.mubr.bf16.vlgmr.msra.gmra.mrb[8].mxu0 %v4158_v31 }
 0x3cc   :  { %v2340_v31 = vpop.f32.mrb[4].mxu0  ;;  %v2426_v24 = vpop.f32.mrb[12].mxu1 }
 0x3cd   :  { %v3077_v25 = vadd.f32 %v2340_v31, %v1079_v20  ;;  %v3081_v26 = vadd.f32 %v2426_v24, %v1087_v21  ;;  %v2342_v27 = vpop.f32.mrb[5].mxu0  ;;  %v2428_v28 = vpop.f32.mrb[13].mxu1 }
 0x3ce   :  { %v3078_v29 = vadd.f32 %v2342_v27, %v1083_v22  ;;  %v3082_v34 = vadd.f32 %v2428_v28, %v1091_v23  ;;  %v2344_v41 = vpop.f32.mrb[6].mxu0  ;;  %v2430_v35 = vpop.f32.mrb[14].mxu1 }
 0x3cf   :  { %v2603_v36 = vmul.f32 0.5, %v3077_v25  ;;  %v2605_v37 = vmul.f32 0.5, %v3081_v26  ;;  %v3079_v63 = vadd.f32 %v2344_v41, %v1079_v20  ;;  %v3083_v38 = vadd.f32 %v2430_v35, %v1087_v21  ;;  %v2346_v39 = vpop.f32.mrb[7].mxu0  ;;  %v2432_v43 = vpop.f32.mrb[15].mxu1 }
 0x3d0   :  { %v2604_v42 = vmul.f32 0.5, %v3078_v29  ;;  %v2606_v44 = vmul.f32 0.5, %v3082_v34  ;;  %v3080_v45 = vadd.f32 %v2346_v39, %v1083_v22  ;;  %v3084_v1 = vadd.f32 %v2432_v43, %v1091_v23 }
 0x3d1   :  { %3556 = vtanh.f32 %v2603_v36  ;;  %v2610_v46 = vmul.f32 0.5, %v3079_v63  ;;  %v2612_v47 = vmul.f32 0.5, %v3083_v38  ;;  %v1094_v63 = vsub.s32 4, %v3940_v40 }
 0x3d2   :  { %3558 = vtanh.f32 %v2605_v37  ;;  %v2611_v48 = vmul.f32 0.5, %v3080_v45  ;;  %v2613_v49 = vmul.f32 0.5, %v3084_v1  ;;  %v1098_v38 = vsub.s32 5, %v3940_v40 }
 0x3d3   :  { %3560 = vtanh.f32 %v2604_v42  ;;  %v1095_v39 = vrot.slane %v4657_v19, %v1094_v63 }
 0x3d4   :  { %3562 = vtanh.f32 %v2606_v44  ;;  %v1099_v43 = vrot.slane %v4657_v19, %v1098_v38 }
 0x3d5   :  { %3564 = vtanh.f32 %v2610_v46 }
 0x3d6   :  { %3566 = vtanh.f32 %v2612_v47 }
 0x3d7   :  { %3568 = vtanh.f32 %v2611_v48 }
 0x3d8   :  { %3570 = vtanh.f32 %v2613_v49 }
 0x3db   :  { %v3557_v50 = vpop.eup %3556 }
 0x3dc   :  { %v3559_v51 = vpop.eup %3558  ;;  %v2631_v52 = vmul.f32 0.5, %v3557_v50 }
 0x3dd   :  { %v3561_v53 = vpop.eup %3560  ;;  %v2633_v54 = vmul.f32 0.5, %v3559_v51 }
 0x3de   :  { %v3563_v32 = vpop.eup %3562  ;;  %v2645_v55 = vadd.f32 0.5, %v2631_v52  ;;  %v2632_v56 = vmul.f32 0.5, %v3561_v53 }
 0x3df   :  { %v3565_v30 = vpop.eup %3564  ;;  %v2647_v33 = vadd.f32 0.5, %v2633_v54  ;;  %v2634_v57 = vmul.f32 0.5, %v3563_v32 }
 0x3e0   :  { %v3567_v58 = vpop.eup %3566  ;;  %2659 = vst [vmem:[#allocation2] sm:$0xff] %v2645_v55  ;;  %v2646_v59 = vadd.f32 0.5, %v2632_v56  ;;  %v2638_v60 = vmul.f32 0.5, %v3565_v30 }
 0x3e1   :  { %v3569_v61 = vpop.eup %3568  ;;  %2661 = vst [vmem:[#allocation2 + $0x10] sm:$0xff] %v2647_v33  ;;  %v2648_v62 = vadd.f32 0.5, %v2634_v57  ;;  %v2640_v0 = vmul.f32 0.5, %v3567_v58 }
 0x3e2   :  { %v3571_v2 = vpop.eup %3570  ;;  %2660 = vst [vmem:[#allocation2 + $0x8] sm:$0xff] %v2646_v59  ;;  %v2652_v3 = vadd.f32 0.5, %v2638_v60  ;;  %v2639_v4 = vmul.f32 0.5, %v3569_v61 }
 0x3e3   :  { %2662 = vst [vmem:[#allocation2 + $0x18] sm:$0xff] %v2648_v62  ;;  %v2654_v5 = vadd.f32 0.5, %v2640_v0  ;;  %v2641_v6 = vmul.f32 0.5, %v3571_v2 }
 0x3e4   :  { %2667 = vst [vmem:[#allocation2 + $0x38] sm:$0xff] %v2652_v3  ;;  %v2653_v7 = vadd.f32 0.5, %v2639_v4 }
 0x3e5   :  { %2669 = vst [vmem:[#allocation2 + $0x48] sm:$0xff] %v2654_v5  ;;  %v2655_v8 = vadd.f32 0.5, %v2641_v6 }
 0x3e6   :  { %2668 = vst [vmem:[#allocation2 + $0x40] sm:$0xff] %v2653_v7 }
 0x3e7   :  { %2670 = vst [vmem:[#allocation2 + $0x50] sm:$0xff] %v2655_v8 }
 0x3ed   :  { %v3029_v9 = vpop.f32.mrb[16].mxu1 }
 0x3ee   :  { %v3030_v10 = vpop.f32.mrb[17].mxu1 }
 0x3ef   :  { %v3031_v11 = vadd.f32 %v3030_v10, %v3029_v9  ;;  %v3032_v12 = vpop.f32.mrb[18].mxu1 }
 0x3f0   :  { %v3033_v13 = vpop.f32.mrb[19].mxu1 }
 0x3f1   :  { %v3034_v14 = vadd.f32 %v3033_v13, %v3032_v12  ;;  %v2556_v20 = vadd.f32 %v3031_v11, %v1103_v16 }
 0x3f3   :  { %v2559_v31 = vadd.f32 %v3034_v14, %v1103_v16 }
 0x40d   :  { %v3051_v17 = vpop.f32.mrb[20].mxu1 }
 0x40e   :  { %v3052_v18 = vpop.f32.mrb[21].mxu1 }
 0x40f   :  { %v3053_v21 = vadd.f32 %v3052_v18, %v3051_v17  ;;  %v3054_v22 = vpop.f32.mrb[22].mxu1 }
 0x410   :  { %v3055_v23 = vpop.f32.mrb[23].mxu1 }
 0x411   :  { %v2597_v24 = vadd.f32 %v3053_v21, %v2556_v20  ;;  %v3056_v25 = vadd.f32 %v3055_v23, %v3054_v22 }
 0x413   :  { %v2609_v26 = vmul.f32 0.5, %v2597_v24  ;;  %v2600_v27 = vadd.f32 %v3056_v25, %v2559_v31 }
 0x415   :  { %3572 = vtanh.f32 %v2609_v26  ;;  %v2616_v28 = vmul.f32 0.5, %v2600_v27 }
 0x417   :  { %3574 = vtanh.f32 %v2616_v28 }
 0x41f   :  { %v3573_v29 = vpop.eup %3572 }
 0x420   :  { %v2637_v34 = vmul.f32 0.5, %v3573_v29 }
 0x421   :  { %v3575_v41 = vpop.eup %3574 }
 0x422   :  { %v2651_v35 = vadd.f32 0.5, %v2637_v34  ;;  %v2644_v36 = vmul.f32 0.5, %v3575_v41 }
 0x424   :  { %2666 = vst.msk [vmem:[#allocation2 + $0x30] sm:$0xff] %vm2665_vm1, %v2651_v35  ;;  %v2658_v37 = vadd.f32 0.5, %v2644_v36 }
 0x426   :  { %2673 = vst.msk [vmem:[#allocation2 + $0x68] sm:$0xff] %vm2665_vm1, %v2658_v37 }
 0x44c   :  { %v2512_v42 = vpop.f32.mrb[8].mxu0 }
 0x44d   :  { %v3085_v44 = vadd.f32 %v2512_v42, %v1095_v39  ;;  %v2514_v45 = vpop.f32.mrb[9].mxu0 }
 0x44e   :  { %v3086_v1 = vadd.f32 %v2514_v45, %v1099_v43  ;;  %v2516_v46 = vpop.f32.mrb[10].mxu0 }
 0x44f   :  { %v2607_v47 = vmul.f32 0.5, %v3085_v44  ;;  %v3087_v48 = vadd.f32 %v2516_v46, %v1095_v39  ;;  %v2518_v49 = vpop.f32.mrb[11].mxu0 }
 0x450   :  { %v2608_v50 = vmul.f32 0.5, %v3086_v1  ;;  %v3088_v51 = vadd.f32 %v2518_v49, %v1099_v43 }
 0x451   :  { %3576 = vtanh.f32 %v2607_v47  ;;  %v2614_v52 = vmul.f32 0.5, %v3087_v48 }
 0x452   :  { %3578 = vtanh.f32 %v2608_v50  ;;  %v2615_v53 = vmul.f32 0.5, %v3088_v51 }
 0x453   :  { %3580 = vtanh.f32 %v2614_v52 }
 0x454   :  { %3582 = vtanh.f32 %v2615_v53 }
 0x45b   :  { %v3577_v40 = vpop.eup %3576 }
 0x45c   :  { %v3579_v54 = vpop.eup %3578  ;;  %v2635_v32 = vmul.f32 0.5, %v3577_v40 }
 0x45d   :  { %v3581_v19 = vpop.eup %3580  ;;  %v2636_v55 = vmul.f32 0.5, %v3579_v54 }
 0x45e   :  { %v3583_v56 = vpop.eup %3582  ;;  %v2649_v30 = vadd.f32 0.5, %v2635_v32  ;;  %v2642_v33 = vmul.f32 0.5, %v3581_v19 }
 0x45f   :  { %v2650_v57 = vadd.f32 0.5, %v2636_v55  ;;  %v2643_v58 = vmul.f32 0.5, %v3583_v56 }
 0x460   :  { %2663 = vst [vmem:[#allocation2 + $0x20] sm:$0xff] %v2649_v30  ;;  %v2656_v59 = vadd.f32 0.5, %v2642_v33 }
 0x461   :  { %2664 = vst [vmem:[#allocation2 + $0x28] sm:$0xff] %v2650_v57  ;;  %v2657_v60 = vadd.f32 0.5, %v2643_v58 }
 0x462   :  { %2671 = vst [vmem:[#allocation2 + $0x58] sm:$0xff] %v2656_v59 }
 0x463   :  { %2672 = vst [vmem:[#allocation2 + $0x60] sm:$0xff] %v2657_v60 }
 0x464   :  { %3595 = shalt.err (!%p3592_p4)
}
 0x465   :  { %s3596_s29 = scalar_lea.hbm %s4696_s9, 1792 }
 0x466   :  { %p3597_p5 = scmp.ne.s32.totalorder %s4696_s9, %s3596_s29  ;;  %p3600_p6 = scmp.lt.u32.totalorder %s3596_s29, %s4696_s9 }
 0x468   :  { %p3602_p7 = pnand %p3600_p6, %p3597_p5 }
 0x46a   :  { %3605 = shalt.err (!%p3602_p7)
}
 0x46b   :  { %s3612_s12 = smov 896   ;;  %s3613_s13 = smov 56  }
 0x46c   :  { %2685 = dma.vmem_to_hbm [thread:$0]  %s2680_s8, 1792, %s4696_s9, [#allocation3], %s3612_s12, %s3612_s12, %s3613_s13  }
 0x46d   :  { %3606 = dma.done.wait [#allocation3], 1792  }
 0x46e   :  { %3607 = vsyncadd [#allocation3], 4294965504 }
 0x46f   :  { %2689 = vsyncpa [#allocation3], 1 }

</bundles_post_ra>
